<compile_context>
chip_gen: v5e
topology: v5e:2x2
jax: 0.10.0
libtpu: 0.0.40
codegen_flags: <defaults>
</compile_context>

<pallas_src>
from functools import partial

import jax
import jax.numpy as jnp
import numpy as np
from jax import lax
from jax.experimental import pallas as pl
from jax.experimental.pallas import tpu as pltpu


# --------------------------------------------------------------------------- kernel
def _make_mask_head_kernel(num_conv, H, W, n_img, deconv_out_ch):
    HW = H * W
    O = deconv_out_ch

    def kernel(*refs):
        x_ref = refs[0]
        conv_refs = refs[1:1 + 2 * num_conv]                     # (w3, b) pairs
        wd_ref, bd_ref, wl_ref, bl_ref = refs[1 + 2 * num_conv:5 + 2 * num_conv]
        o_ref = refs[5 + 2 * num_conv]
        pad_ref = refs[6 + 2 * num_conv]   # (Cmax, HW + 4W) f32 zero-halo flat buffer

        # Zero ONLY the halo borders; the interior is overwritten every layer.
        # (Done every grid step: scratch is per-core under "parallel" semantics.)
        zero_border = jnp.zeros((pad_ref.shape[0], 2 * W), pad_ref.dtype)
        pad_ref[:, 0:2 * W] = zero_border
        pad_ref[:, 2 * W + HW:] = zero_border

        # Horizontal-wrap masks, generated in-kernel (no DMA'd mask inputs).
        col = lax.broadcasted_iota(jnp.int32, (1, HW), 1) % W
        not_left = (col != 0).astype(jnp.float32)        # kills j == 0     (kx = -1)
        not_right = (col != W - 1).astype(jnp.float32)   # kills j == W - 1 (kx = +1)

        for bi in range(n_img):                          # batch block, unrolled
            a = x_ref[bi].astype(jnp.float32)            # (Cin, HW), spatial on lanes

            for l in range(num_conv):
                w_ref, b_ref = conv_refs[2 * l], conv_refs[2 * l + 1]
                cdt = w_ref.dtype                        # MXU compute dtype
                cin = w_ref.shape[2]

                # stage activation into the halo buffer interior (lane offset 2W)
                pad_ref[0:cin, 2 * W:2 * W + HW] = a

                # 9 accumulated matmuls, grouped by kx so only 2 border-mask
                # multiplies are needed (applied post-matmul on (Cout, HW)).
                left = mid = right = None
                for ky in (-1, 0, 1):
                    base = 2 * W + ky * W
                    t0 = 3 * (ky + 1)
                    tl = pad_ref[0:cin, base - 1:base - 1 + HW].astype(cdt)
                    tm = pad_ref[0:cin, base:base + HW].astype(cdt)
                    tr = pad_ref[0:cin, base + 1:base + 1 + HW].astype(cdt)
                    dl = jnp.dot(w_ref[t0 + 0], tl, preferred_element_type=jnp.float32)
                    dm = jnp.dot(w_ref[t0 + 1], tm, preferred_element_type=jnp.float32)
                    dr = jnp.dot(w_ref[t0 + 2], tr, preferred_element_type=jnp.float32)
                    left = dl if left is None else left + dl
                    mid = dm if mid is None else mid + dm
                    right = dr if right is None else right + dr

                a = mid + left * not_left + right * not_right + b_ref[...]
                a = jnp.maximum(a, 0.0)                  # (Cout, HW) f32

            # ConvTranspose2d(2,2) + ReLU: 4 taps stacked -> one dense matmul
            u = jnp.dot(wd_ref[...], a.astype(wd_ref.dtype),
                        preferred_element_type=jnp.float32) + bd_ref[...]
            u = jnp.maximum(u, 0.0)                      # (4*O, HW)

            # 1x1 logit conv applied PER TAP (no block-diagonal zeros)
            z_parts = []
            for t in range(4):
                u_t = u[t * O:(t + 1) * O, :].astype(wl_ref.dtype)
                z_parts.append(jnp.dot(wl_ref[...], u_t,
                                       preferred_element_type=jnp.float32) + bl_ref[...])
            o_ref[bi] = jnp.concatenate(z_parts, axis=0)  # (4*K, HW) lane-dense

    return kernel


# --------------------------------------------------------------------------- packing (once, outside jit)
def pack_mask_head_params(params, compute_dtype=jnp.float32):
    """Repack PyTorch-layout weights for the kernel. Call once at init time."""
    packed = {"convs": []}
    for w, b in params["convs"]:                    # w: (Cout, Cin, 3, 3)  b: (Cout,)
        co, ci = w.shape[0], w.shape[1]
        w9 = jnp.asarray(w).transpose(2, 3, 0, 1).reshape(9, co, ci)   # tap-major
        packed["convs"].append((w9.astype(compute_dtype),
                                jnp.asarray(b).reshape(co, 1).astype(jnp.float32)))
    wd, bd = params["deconv_w"], params["deconv_b"]  # (C, O, 2, 2), (O,)
    C, O = wd.shape[0], wd.shape[1]
    packed["deconv_w"] = jnp.asarray(wd).transpose(2, 3, 1, 0).reshape(4 * O, C) \
                            .astype(compute_dtype)                     # (4*O, C)
    packed["deconv_b"] = jnp.tile(jnp.asarray(bd).reshape(1, O), (4, 1)) \
                            .reshape(4 * O, 1).astype(jnp.float32)
    packed["logit_w"] = jnp.asarray(params["logit_w"])[:, :, 0, 0] \
                            .astype(compute_dtype)                     # (K, O)
    packed["logit_b"] = jnp.asarray(params["logit_b"]).reshape(-1, 1) \
                            .astype(jnp.float32)
    return packed


# --------------------------------------------------------------------------- wrapper
@jax.jit
def mask_head_forward(x_nchw, packed):
    B, C0, H, W = x_nchw.shape
    HW = H * W
    num_conv = len(packed["convs"])
    K, O = packed["logit_w"].shape

    # batch blocking: largest divisor of B that is <= 8 (amortize per-step cost)
    bblk = 1
    for d in range(1, min(B, 8) + 1):
        if B % d == 0:
            bblk = d
    n_blocks = B // bblk

    cmax = C0
    for w9, _ in packed["convs"]:
        cmax = max(cmax, int(w9.shape[1]), int(w9.shape[2]))
    cmax = max(cmax, 8)                              # sublane-aligned scratch rows

    x_flat = x_nchw.reshape(B, C0, HW).astype(jnp.float32)   # free (bitcast) reshape

    inputs = [x_flat]
    in_specs = [pl.BlockSpec((bblk, C0, HW), lambda g: (g, 0, 0))]
    for w9, b2 in packed["convs"]:
        inputs += [w9, b2]
        in_specs += [pl.BlockSpec(w9.shape, lambda g: (0, 0, 0)),
                     pl.BlockSpec(b2.shape, lambda g: (0, 0))]
    tail = [packed["deconv_w"], packed["deconv_b"], packed["logit_w"], packed["logit_b"]]
    inputs += tail
    in_specs += [pl.BlockSpec(a.shape, lambda g: (0, 0)) for a in tail]

    z = pl.pallas_call(
        _make_mask_head_kernel(num_conv, H, W, bblk, O),
        out_shape=jax.ShapeDtypeStruct((B, 4 * K, HW), jnp.float32),
        grid=(n_blocks,),
        in_specs=in_specs,
        out_specs=pl.BlockSpec((bblk, 4 * K, HW), lambda g: (g, 0, 0)),
        scratch_shapes=[pltpu.VMEM((cmax, HW + 4 * W), jnp.float32)],  # zero-halo buffer
        compiler_params=pltpu.CompilerParams(dimension_semantics=("parallel",)),
    )(*inputs)

    # tiny epilogue (~24 KB): interleave the 2x2 deconv taps into NCHW
    out = z.reshape(B, 2, 2, K, H, W).transpose(0, 3, 4, 1, 5, 2)
    return out.reshape(B, K, 2 * H, 2 * W)


# --------------------------------------------------------------------------- params / reference
def init_mask_head_params(key, num_conv, in_channel, out_channel, num_classes):
    # PyTorch layouts: Conv2d (O,I,3,3); ConvTranspose2d (I,O,2,2); logit Conv2d (K,O,1,1)
    params = {"convs": []}
    c_in = in_channel
    for _ in range(num_conv):
        key, kw, kb = jax.random.split(key, 3)
        w = jax.random.normal(kw, (out_channel, c_in, 3, 3), jnp.float32) * 0.1
        b = jax.random.normal(kb, (out_channel,), jnp.float32) * 0.1
        params["convs"].append((w, b))
        c_in = out_channel
    key, kw, kb = jax.random.split(key, 3)
    params["deconv_w"] = jax.random.normal(
        kw, (out_channel, out_channel, 2, 2), jnp.float32) * 0.1
    params["deconv_b"] = jax.random.normal(kb, (out_channel,), jnp.float32) * 0.1
    key, kw, kb = jax.random.split(key, 3)
    params["logit_w"] = jax.random.normal(
        kw, (num_classes, out_channel, 1, 1), jnp.float32) * 0.1
    params["logit_b"] = jax.random.normal(kb, (num_classes,), jnp.float32) * 0.1
    return params


def mask_head_reference(x_nchw, params):
    y = x_nchw.astype(jnp.float32)
    for w, b in params["convs"]:
        y = lax.conv_general_dilated(
            y, w, window_strides=(1, 1), padding=((1, 1), (1, 1)),
            dimension_numbers=("NCHW", "OIHW", "NCHW"))
        y = jnp.maximum(y + b.reshape(1, -1, 1, 1), 0.0)
    wd, bd = params["deconv_w"], params["deconv_b"]
    B, C, H, W = y.shape
    O = wd.shape[1]
    t = jnp.einsum("bcij,coyx->boiyjx", y, wd) + bd.reshape(1, -1, 1, 1, 1, 1)
    t = jnp.maximum(t, 0.0)
    y = t.reshape(B, O, 2 * H, 2 * W)
    wl = params["logit_w"][:, :, 0, 0]
    y = jnp.einsum("bchw,kc->bkhw", y, wl) + params["logit_b"].reshape(1, -1, 1, 1)
    return y


# --------------------------------------------------------------------------- main
if __name__ == "__main__":
    num_conv = 2
    resolution = 16
    in_channel = 4
    out_channel = 8
    num_classes = 3
    batch = 2

    key = jax.random.PRNGKey(0)
    key, kx = jax.random.split(key)
    x = jax.random.normal(kx, (batch, in_channel, resolution, resolution), jnp.float32)
    params = init_mask_head_params(key, num_conv, in_channel, out_channel, num_classes)

    ref = jax.block_until_ready(mask_head_reference(x, params))

    # f32 MXU path: exact PyTorch semantics, tight tolerance.
    packed_f32 = pack_mask_head_params(params, jnp.float32)
    out = jax.block_until_ready(mask_head_forward(x, packed_f32))
    assert out.shape == (batch, num_classes, 2 * resolution, 2 * resolution), out.shape
    assert np.allclose(np.asarray(out), np.asarray(ref), atol=1e-4, rtol=1e-4), \
        "Pallas f32 output mismatch vs reference"

    # bf16 MXU path (v6e/v7x fast path): relaxed tolerance vs f32 reference.
    packed_bf16 = pack_mask_head_params(params, jnp.bfloat16)
    out_bf16 = jax.block_until_ready(mask_head_forward(x, packed_bf16))
    assert np.allclose(np.asarray(out_bf16), np.asarray(ref), atol=1e-1, rtol=1e-1), \
        "Pallas bf16 output mismatch vs reference (beyond bf16 tolerance)"

    print("KERNEL_OK")
</pallas_src>

<mosaic_0001>
module attributes {stable_mosaic.version = 11 : i64} {
  func.func @kernel(%arg0: i32, %arg1: memref<2x4x256xf32, #tpu.memory_space<vmem>>, %arg2: memref<9x8x4xf32, #tpu.memory_space<vmem>>, %arg3: memref<8x1xf32, #tpu.memory_space<vmem>>, %arg4: memref<9x8x8xf32, #tpu.memory_space<vmem>>, %arg5: memref<8x1xf32, #tpu.memory_space<vmem>>, %arg6: memref<32x8xf32, #tpu.memory_space<vmem>>, %arg7: memref<32x1xf32, #tpu.memory_space<vmem>>, %arg8: memref<3x8xf32, #tpu.memory_space<vmem>>, %arg9: memref<3x1xf32, #tpu.memory_space<vmem>>, %arg10: memref<2x12x256xf32, #tpu.memory_space<vmem>>, %arg11: memref<8x320xf32, #tpu.memory_space<vmem>>) attributes {dimension_semantics = [#tpu.dimension_semantics<parallel>], iteration_bounds = array<i64: 1>, scalar_prefetch = 0 : i64, scratch_operands = 1 : i64, tpu.core_type = #tpu.core_type<tc>, window_params = [{transform_indices = @transform_0, window_bounds = array<i64: 2, 4, 256>}, {pipeline_mode = #tpu.pipeline_mode<synchronous>, transform_indices = @transform_1, window_bounds = array<i64: 9, 8, 4>}, {pipeline_mode = #tpu.pipeline_mode<synchronous>, transform_indices = @transform_2, window_bounds = array<i64: 8, 1>}, {pipeline_mode = #tpu.pipeline_mode<synchronous>, transform_indices = @transform_3, window_bounds = array<i64: 9, 8, 8>}, {pipeline_mode = #tpu.pipeline_mode<synchronous>, transform_indices = @transform_4, window_bounds = array<i64: 8, 1>}, {pipeline_mode = #tpu.pipeline_mode<synchronous>, transform_indices = @transform_5, window_bounds = array<i64: 32, 8>}, {pipeline_mode = #tpu.pipeline_mode<synchronous>, transform_indices = @transform_6, window_bounds = array<i64: 32, 1>}, {pipeline_mode = #tpu.pipeline_mode<synchronous>, transform_indices = @transform_7, window_bounds = array<i64: 3, 8>}, {pipeline_mode = #tpu.pipeline_mode<synchronous>, transform_indices = @transform_8, window_bounds = array<i64: 3, 1>}, {transform_indices = @transform_9, window_bounds = array<i64: 2, 12, 256>}]} {
    %cst = arith.constant 0.000000e+00 : f32
    %0 = vector.broadcast %cst : f32 to vector<8x32xf32>
    %c0 = arith.constant 0 : index
    %c0_0 = arith.constant 0 : index
    %1 = vector.load %arg11[%c0, %c0_0] : memref<8x320xf32, #tpu.memory_space<vmem>>, vector<8x32xf32>
    tpu.vector_store %arg11[%c0, %c0_0], %0 {strides = array<i32>} : memref<8x320xf32, #tpu.memory_space<vmem>>, vector<8x32xf32>,
    %c0_1 = arith.constant 0 : index
    %c288 = arith.constant 288 : index
    %2 = vector.load %arg11[%c0_1, %c288] : memref<8x320xf32, #tpu.memory_space<vmem>>, vector<8x32xf32>
    tpu.vector_store %arg11[%c0_1, %c288], %0 {strides = array<i32>} : memref<8x320xf32, #tpu.memory_space<vmem>>, vector<8x32xf32>,
    %3 = tpu.iota {dimensions = array<i32: 1>} : vector<1x256xi32>
    %c16_i32 = arith.constant 16 : i32
    %c0_i32 = arith.constant 0 : i32
    %4 = arith.cmpi eq, %c16_i32, %c0_i32 : i32
    %c1_i32 = arith.constant 1 : i32
    %5 = arith.select %4, %c1_i32, %c16_i32 : i32
    %6 = vector.broadcast %5 : i32 to vector<1x256xi32>
    %7 = arith.remsi %3, %6 : vector<1x256xi32>
    %c0_i32_2 = arith.constant 0 : i32
    %8 = vector.broadcast %c0_i32_2 : i32 to vector<1x256xi32>
    %9 = arith.cmpi ne, %7, %8 : vector<1x256xi32>
    %c0_i32_3 = arith.constant 0 : i32
    %10 = vector.broadcast %c0_i32_3 : i32 to vector<1x256xi32>
    %11 = arith.cmpi slt, %7, %10 : vector<1x256xi32>
    %c0_i32_4 = arith.constant 0 : i32
    %12 = arith.cmpi slt, %5, %c0_i32_4 : i32
    %13 = vector.broadcast %12 : i1 to vector<1x256xi1>
    %14 = vector.broadcast %13 : vector<1x256xi1> to vector<1x256xi1>
    %15 = arith.xori %11, %14 : vector<1x256xi1>
    %16 = arith.andi %15, %9 : vector<1x256xi1>
    %17 = vector.broadcast %5 : i32 to vector<1x256xi32>
    %18 = arith.addi %7, %17 : vector<1x256xi32>
    %19 = arith.select %16, %18, %7 : vector<1x256xi1>, vector<1x256xi32>
    %c0_i32_5 = arith.constant 0 : i32
    %20 = vector.broadcast %c0_i32_5 : i32 to vector<1x256xi32>
    %21 = arith.cmpi ne, %19, %20 : vector<1x256xi32>
    %22 = arith.extui %21 : vector<1x256xi1> to vector<1x256xi32>
    %23 = arith.sitofp %22 : vector<1x256xi32> to vector<1x256xf32>
    %c15_i32 = arith.constant 15 : i32
    %24 = vector.broadcast %c15_i32 : i32 to vector<1x256xi32>
    %25 = arith.cmpi ne, %19, %24 : vector<1x256xi32>
    %26 = arith.extui %25 : vector<1x256xi1> to vector<1x256xi32>
    %27 = arith.sitofp %26 : vector<1x256xi32> to vector<1x256xf32>
    %c0_6 = arith.constant 0 : index
    %c0_7 = arith.constant 0 : index
    %c0_8 = arith.constant 0 : index
    %28 = vector.load %arg1[%c0_6, %c0_7, %c0_8] : memref<2x4x256xf32, #tpu.memory_space<vmem>>, vector<1x4x256xf32>
    %29 = vector.shape_cast %28 : vector<1x4x256xf32> to vector<4x256xf32>
    %c0_9 = arith.constant 0 : index
    %c32 = arith.constant 32 : index
    %30 = vector.load %arg11[%c0_9, %c32] : memref<8x320xf32, #tpu.memory_space<vmem>>, vector<4x256xf32>
    tpu.vector_store %arg11[%c0_9, %c32], %29 {strides = array<i32>} : memref<8x320xf32, #tpu.memory_space<vmem>>, vector<4x256xf32>,
    %c0_10 = arith.constant 0 : index
    %c15 = arith.constant 15 : index
    %31 = vector.load %arg11[%c0_10, %c15] : memref<8x320xf32, #tpu.memory_space<vmem>>, vector<4x256xf32>
    %c0_11 = arith.constant 0 : index
    %c16 = arith.constant 16 : index
    %32 = vector.load %arg11[%c0_11, %c16] : memref<8x320xf32, #tpu.memory_space<vmem>>, vector<4x256xf32>
    %c0_12 = arith.constant 0 : index
    %c17 = arith.constant 17 : index
    %33 = vector.load %arg11[%c0_12, %c17] : memref<8x320xf32, #tpu.memory_space<vmem>>, vector<4x256xf32>
    %c0_13 = arith.constant 0 : index
    %c0_14 = arith.constant 0 : index
    %c0_15 = arith.constant 0 : index
    %34 = vector.load %arg2[%c0_13, %c0_14, %c0_15] : memref<9x8x4xf32, #tpu.memory_space<vmem>>, vector<1x8x4xf32>
    %35 = vector.shape_cast %34 : vector<1x8x4xf32> to vector<8x4xf32>
    %cst_16 = arith.constant dense<0.000000e+00> : vector<8x256xf32>
    %36 = tpu.matmul %35, %31, %cst_16 {dimension_numbers = #tpu.dot_dimension_numbers<[1], [0], [0], [1], [0, 0, 1, 1], [], []>} : vector<8x4xf32>, vector<4x256xf32>, vector<8x256xf32> -> vector<8x256xf32>
    %c1 = arith.constant 1 : index
    %c0_17 = arith.constant 0 : index
    %c0_18 = arith.constant 0 : index
    %37 = vector.load %arg2[%c1, %c0_17, %c0_18] : memref<9x8x4xf32, #tpu.memory_space<vmem>>, vector<1x8x4xf32>
    %38 = vector.shape_cast %37 : vector<1x8x4xf32> to vector<8x4xf32>
    %cst_19 = arith.constant dense<0.000000e+00> : vector<8x256xf32>
    %39 = tpu.matmul %38, %32, %cst_19 {dimension_numbers = #tpu.dot_dimension_numbers<[1], [0], [0], [1], [0, 0, 1, 1], [], []>} : vector<8x4xf32>, vector<4x256xf32>, vector<8x256xf32> -> vector<8x256xf32>
    %c2 = arith.constant 2 : index
    %c0_20 = arith.constant 0 : index
    %c0_21 = arith.constant 0 : index
    %40 = vector.load %arg2[%c2, %c0_20, %c0_21] : memref<9x8x4xf32, #tpu.memory_space<vmem>>, vector<1x8x4xf32>
    %41 = vector.shape_cast %40 : vector<1x8x4xf32> to vector<8x4xf32>
    %cst_22 = arith.constant dense<0.000000e+00> : vector<8x256xf32>
    %42 = tpu.matmul %41, %33, %cst_22 {dimension_numbers = #tpu.dot_dimension_numbers<[1], [0], [0], [1], [0, 0, 1, 1], [], []>} : vector<8x4xf32>, vector<4x256xf32>, vector<8x256xf32> -> vector<8x256xf32>
    %c0_23 = arith.constant 0 : index
    %c31 = arith.constant 31 : index
    %43 = vector.load %arg11[%c0_23, %c31] : memref<8x320xf32, #tpu.memory_space<vmem>>, vector<4x256xf32>
    %c0_24 = arith.constant 0 : index
    %c32_25 = arith.constant 32 : index
    %44 = vector.load %arg11[%c0_24, %c32_25] : memref<8x320xf32, #tpu.memory_space<vmem>>, vector<4x256xf32>
    %c0_26 = arith.constant 0 : index
    %c33 = arith.constant 33 : index
    %45 = vector.load %arg11[%c0_26, %c33] : memref<8x320xf32, #tpu.memory_space<vmem>>, vector<4x256xf32>
    %c3 = arith.constant 3 : index
    %c0_27 = arith.constant 0 : index
    %c0_28 = arith.constant 0 : index
    %46 = vector.load %arg2[%c3, %c0_27, %c0_28] : memref<9x8x4xf32, #tpu.memory_space<vmem>>, vector<1x8x4xf32>
    %47 = vector.shape_cast %46 : vector<1x8x4xf32> to vector<8x4xf32>
    %cst_29 = arith.constant dense<0.000000e+00> : vector<8x256xf32>
    %48 = tpu.matmul %47, %43, %cst_29 {dimension_numbers = #tpu.dot_dimension_numbers<[1], [0], [0], [1], [0, 0, 1, 1], [], []>} : vector<8x4xf32>, vector<4x256xf32>, vector<8x256xf32> -> vector<8x256xf32>
    %c4 = arith.constant 4 : index
    %c0_30 = arith.constant 0 : index
    %c0_31 = arith.constant 0 : index
    %49 = vector.load %arg2[%c4, %c0_30, %c0_31] : memref<9x8x4xf32, #tpu.memory_space<vmem>>, vector<1x8x4xf32>
    %50 = vector.shape_cast %49 : vector<1x8x4xf32> to vector<8x4xf32>
    %cst_32 = arith.constant dense<0.000000e+00> : vector<8x256xf32>
    %51 = tpu.matmul %50, %44, %cst_32 {dimension_numbers = #tpu.dot_dimension_numbers<[1], [0], [0], [1], [0, 0, 1, 1], [], []>} : vector<8x4xf32>, vector<4x256xf32>, vector<8x256xf32> -> vector<8x256xf32>
    %c5 = arith.constant 5 : index
    %c0_33 = arith.constant 0 : index
    %c0_34 = arith.constant 0 : index
    %52 = vector.load %arg2[%c5, %c0_33, %c0_34] : memref<9x8x4xf32, #tpu.memory_space<vmem>>, vector<1x8x4xf32>
    %53 = vector.shape_cast %52 : vector<1x8x4xf32> to vector<8x4xf32>
    %cst_35 = arith.constant dense<0.000000e+00> : vector<8x256xf32>
    %54 = tpu.matmul %53, %45, %cst_35 {dimension_numbers = #tpu.dot_dimension_numbers<[1], [0], [0], [1], [0, 0, 1, 1], [], []>} : vector<8x4xf32>, vector<4x256xf32>, vector<8x256xf32> -> vector<8x256xf32>
    %55 = arith.addf %36, %48 : vector<8x256xf32>
    %56 = arith.addf %39, %51 : vector<8x256xf32>
    %57 = arith.addf %42, %54 : vector<8x256xf32>
    %c0_36 = arith.constant 0 : index
    %c47 = arith.constant 47 : index
    %58 = vector.load %arg11[%c0_36, %c47] : memref<8x320xf32, #tpu.memory_space<vmem>>, vector<4x256xf32>
    %c0_37 = arith.constant 0 : index
    %c48 = arith.constant 48 : index
    %59 = vector.load %arg11[%c0_37, %c48] : memref<8x320xf32, #tpu.memory_space<vmem>>, vector<4x256xf32>
    %c0_38 = arith.constant 0 : index
    %c49 = arith.constant 49 : index
    %60 = vector.load %arg11[%c0_38, %c49] : memref<8x320xf32, #tpu.memory_space<vmem>>, vector<4x256xf32>
    %c6 = arith.constant 6 : index
    %c0_39 = arith.constant 0 : index
    %c0_40 = arith.constant 0 : index
    %61 = vector.load %arg2[%c6, %c0_39, %c0_40] : memref<9x8x4xf32, #tpu.memory_space<vmem>>, vector<1x8x4xf32>
    %62 = vector.shape_cast %61 : vector<1x8x4xf32> to vector<8x4xf32>
    %cst_41 = arith.constant dense<0.000000e+00> : vector<8x256xf32>
    %63 = tpu.matmul %62, %58, %cst_41 {dimension_numbers = #tpu.dot_dimension_numbers<[1], [0], [0], [1], [0, 0, 1, 1], [], []>} : vector<8x4xf32>, vector<4x256xf32>, vector<8x256xf32> -> vector<8x256xf32>
    %c7 = arith.constant 7 : index
    %c0_42 = arith.constant 0 : index
    %c0_43 = arith.constant 0 : index
    %64 = vector.load %arg2[%c7, %c0_42, %c0_43] : memref<9x8x4xf32, #tpu.memory_space<vmem>>, vector<1x8x4xf32>
    %65 = vector.shape_cast %64 : vector<1x8x4xf32> to vector<8x4xf32>
    %cst_44 = arith.constant dense<0.000000e+00> : vector<8x256xf32>
    %66 = tpu.matmul %65, %59, %cst_44 {dimension_numbers = #tpu.dot_dimension_numbers<[1], [0], [0], [1], [0, 0, 1, 1], [], []>} : vector<8x4xf32>, vector<4x256xf32>, vector<8x256xf32> -> vector<8x256xf32>
    %c8 = arith.constant 8 : index
    %c0_45 = arith.constant 0 : index
    %c0_46 = arith.constant 0 : index
    %67 = vector.load %arg2[%c8, %c0_45, %c0_46] : memref<9x8x4xf32, #tpu.memory_space<vmem>>, vector<1x8x4xf32>
    %68 = vector.shape_cast %67 : vector<1x8x4xf32> to vector<8x4xf32>
    %cst_47 = arith.constant dense<0.000000e+00> : vector<8x256xf32>
    %69 = tpu.matmul %68, %60, %cst_47 {dimension_numbers = #tpu.dot_dimension_numbers<[1], [0], [0], [1], [0, 0, 1, 1], [], []>} : vector<8x4xf32>, vector<4x256xf32>, vector<8x256xf32> -> vector<8x256xf32>
    %70 = arith.addf %55, %63 : vector<8x256xf32>
    %71 = arith.addf %56, %66 : vector<8x256xf32>
    %72 = arith.addf %57, %69 : vector<8x256xf32>
    %73 = vector.broadcast %23 : vector<1x256xf32> to vector<8x256xf32>
    %74 = arith.mulf %70, %73 : vector<8x256xf32>
    %75 = arith.addf %71, %74 : vector<8x256xf32>
    %76 = vector.broadcast %27 : vector<1x256xf32> to vector<8x256xf32>
    %77 = arith.mulf %72, %76 : vector<8x256xf32>
    %78 = arith.addf %75, %77 : vector<8x256xf32>
    %c0_48 = arith.constant 0 : index
    %c0_49 = arith.constant 0 : index
    %79 = vector.load %arg3[%c0_48, %c0_49] : memref<8x1xf32, #tpu.memory_space<vmem>>, vector<8x1xf32>
    %80 = vector.broadcast %79 : vector<8x1xf32> to vector<8x256xf32>
    %81 = arith.addf %78, %80 : vector<8x256xf32>
    %cst_50 = arith.constant 0.000000e+00 : f32
    %82 = vector.broadcast %cst_50 : f32 to vector<8x256xf32>
    %83 = arith.maximumf %81, %82 : vector<8x256xf32>
    %c0_51 = arith.constant 0 : index
    %c32_52 = arith.constant 32 : index
    %84 = vector.load %arg11[%c0_51, %c32_52] : memref<8x320xf32, #tpu.memory_space<vmem>>, vector<8x256xf32>
    tpu.vector_store %arg11[%c0_51, %c32_52], %83 {strides = array<i32>} : memref<8x320xf32, #tpu.memory_space<vmem>>, vector<8x256xf32>,
    %c0_53 = arith.constant 0 : index
    %c15_54 = arith.constant 15 : index
    %85 = vector.load %arg11[%c0_53, %c15_54] : memref<8x320xf32, #tpu.memory_space<vmem>>, vector<8x256xf32>
    %c0_55 = arith.constant 0 : index
    %c16_56 = arith.constant 16 : index
    %86 = vector.load %arg11[%c0_55, %c16_56] : memref<8x320xf32, #tpu.memory_space<vmem>>, vector<8x256xf32>
    %c0_57 = arith.constant 0 : index
    %c17_58 = arith.constant 17 : index
    %87 = vector.load %arg11[%c0_57, %c17_58] : memref<8x320xf32, #tpu.memory_space<vmem>>, vector<8x256xf32>
    %c0_59 = arith.constant 0 : index
    %c0_60 = arith.constant 0 : index
    %c0_61 = arith.constant 0 : index
    %88 = vector.load %arg4[%c0_59, %c0_60, %c0_61] : memref<9x8x8xf32, #tpu.memory_space<vmem>>, vector<1x8x8xf32>
    %89 = vector.shape_cast %88 : vector<1x8x8xf32> to vector<8x8xf32>
    %cst_62 = arith.constant dense<0.000000e+00> : vector<8x256xf32>
    %90 = tpu.matmul %89, %85, %cst_62 {dimension_numbers = #tpu.dot_dimension_numbers<[1], [0], [0], [1], [0, 0, 1, 1], [], []>} : vector<8x8xf32>, vector<8x256xf32>, vector<8x256xf32> -> vector<8x256xf32>
    %c1_63 = arith.constant 1 : index
    %c0_64 = arith.constant 0 : index
    %c0_65 = arith.constant 0 : index
    %91 = vector.load %arg4[%c1_63, %c0_64, %c0_65] : memref<9x8x8xf32, #tpu.memory_space<vmem>>, vector<1x8x8xf32>
    %92 = vector.shape_cast %91 : vector<1x8x8xf32> to vector<8x8xf32>
    %cst_66 = arith.constant dense<0.000000e+00> : vector<8x256xf32>
    %93 = tpu.matmul %92, %86, %cst_66 {dimension_numbers = #tpu.dot_dimension_numbers<[1], [0], [0], [1], [0, 0, 1, 1], [], []>} : vector<8x8xf32>, vector<8x256xf32>, vector<8x256xf32> -> vector<8x256xf32>
    %c2_67 = arith.constant 2 : index
    %c0_68 = arith.constant 0 : index
    %c0_69 = arith.constant 0 : index
    %94 = vector.load %arg4[%c2_67, %c0_68, %c0_69] : memref<9x8x8xf32, #tpu.memory_space<vmem>>, vector<1x8x8xf32>
    %95 = vector.shape_cast %94 : vector<1x8x8xf32> to vector<8x8xf32>
    %cst_70 = arith.constant dense<0.000000e+00> : vector<8x256xf32>
    %96 = tpu.matmul %95, %87, %cst_70 {dimension_numbers = #tpu.dot_dimension_numbers<[1], [0], [0], [1], [0, 0, 1, 1], [], []>} : vector<8x8xf32>, vector<8x256xf32>, vector<8x256xf32> -> vector<8x256xf32>
    %c0_71 = arith.constant 0 : index
    %c31_72 = arith.constant 31 : index
    %97 = vector.load %arg11[%c0_71, %c31_72] : memref<8x320xf32, #tpu.memory_space<vmem>>, vector<8x256xf32>
    %c0_73 = arith.constant 0 : index
    %c32_74 = arith.constant 32 : index
    %98 = vector.load %arg11[%c0_73, %c32_74] : memref<8x320xf32, #tpu.memory_space<vmem>>, vector<8x256xf32>
    %c0_75 = arith.constant 0 : index
    %c33_76 = arith.constant 33 : index
    %99 = vector.load %arg11[%c0_75, %c33_76] : memref<8x320xf32, #tpu.memory_space<vmem>>, vector<8x256xf32>
    %c3_77 = arith.constant 3 : index
    %c0_78 = arith.constant 0 : index
    %c0_79 = arith.constant 0 : index
    %100 = vector.load %arg4[%c3_77, %c0_78, %c0_79] : memref<9x8x8xf32, #tpu.memory_space<vmem>>, vector<1x8x8xf32>
    %101 = vector.shape_cast %100 : vector<1x8x8xf32> to vector<8x8xf32>
    %cst_80 = arith.constant dense<0.000000e+00> : vector<8x256xf32>
    %102 = tpu.matmul %101, %97, %cst_80 {dimension_numbers = #tpu.dot_dimension_numbers<[1], [0], [0], [1], [0, 0, 1, 1], [], []>} : vector<8x8xf32>, vector<8x256xf32>, vector<8x256xf32> -> vector<8x256xf32>
    %c4_81 = arith.constant 4 : index
    %c0_82 = arith.constant 0 : index
    %c0_83 = arith.constant 0 : index
    %103 = vector.load %arg4[%c4_81, %c0_82, %c0_83] : memref<9x8x8xf32, #tpu.memory_space<vmem>>, vector<1x8x8xf32>
    %104 = vector.shape_cast %103 : vector<1x8x8xf32> to vector<8x8xf32>
    %cst_84 = arith.constant dense<0.000000e+00> : vector<8x256xf32>
    %105 = tpu.matmul %104, %98, %cst_84 {dimension_numbers = #tpu.dot_dimension_numbers<[1], [0], [0], [1], [0, 0, 1, 1], [], []>} : vector<8x8xf32>, vector<8x256xf32>, vector<8x256xf32> -> vector<8x256xf32>
    %c5_85 = arith.constant 5 : index
    %c0_86 = arith.constant 0 : index
    %c0_87 = arith.constant 0 : index
    %106 = vector.load %arg4[%c5_85, %c0_86, %c0_87] : memref<9x8x8xf32, #tpu.memory_space<vmem>>, vector<1x8x8xf32>
    %107 = vector.shape_cast %106 : vector<1x8x8xf32> to vector<8x8xf32>
    %cst_88 = arith.constant dense<0.000000e+00> : vector<8x256xf32>
    %108 = tpu.matmul %107, %99, %cst_88 {dimension_numbers = #tpu.dot_dimension_numbers<[1], [0], [0], [1], [0, 0, 1, 1], [], []>} : vector<8x8xf32>, vector<8x256xf32>, vector<8x256xf32> -> vector<8x256xf32>
    %109 = arith.addf %90, %102 : vector<8x256xf32>
    %110 = arith.addf %93, %105 : vector<8x256xf32>
    %111 = arith.addf %96, %108 : vector<8x256xf32>
    %c0_89 = arith.constant 0 : index
    %c47_90 = arith.constant 47 : index
    %112 = vector.load %arg11[%c0_89, %c47_90] : memref<8x320xf32, #tpu.memory_space<vmem>>, vector<8x256xf32>
    %c0_91 = arith.constant 0 : index
    %c48_92 = arith.constant 48 : index
    %113 = vector.load %arg11[%c0_91, %c48_92] : memref<8x320xf32, #tpu.memory_space<vmem>>, vector<8x256xf32>
    %c0_93 = arith.constant 0 : index
    %c49_94 = arith.constant 49 : index
    %114 = vector.load %arg11[%c0_93, %c49_94] : memref<8x320xf32, #tpu.memory_space<vmem>>, vector<8x256xf32>
    %c6_95 = arith.constant 6 : index
    %c0_96 = arith.constant 0 : index
    %c0_97 = arith.constant 0 : index
    %115 = vector.load %arg4[%c6_95, %c0_96, %c0_97] : memref<9x8x8xf32, #tpu.memory_space<vmem>>, vector<1x8x8xf32>
    %116 = vector.shape_cast %115 : vector<1x8x8xf32> to vector<8x8xf32>
    %cst_98 = arith.constant dense<0.000000e+00> : vector<8x256xf32>
    %117 = tpu.matmul %116, %112, %cst_98 {dimension_numbers = #tpu.dot_dimension_numbers<[1], [0], [0], [1], [0, 0, 1, 1], [], []>} : vector<8x8xf32>, vector<8x256xf32>, vector<8x256xf32> -> vector<8x256xf32>
    %c7_99 = arith.constant 7 : index
    %c0_100 = arith.constant 0 : index
    %c0_101 = arith.constant 0 : index
    %118 = vector.load %arg4[%c7_99, %c0_100, %c0_101] : memref<9x8x8xf32, #tpu.memory_space<vmem>>, vector<1x8x8xf32>
    %119 = vector.shape_cast %118 : vector<1x8x8xf32> to vector<8x8xf32>
    %cst_102 = arith.constant dense<0.000000e+00> : vector<8x256xf32>
    %120 = tpu.matmul %119, %113, %cst_102 {dimension_numbers = #tpu.dot_dimension_numbers<[1], [0], [0], [1], [0, 0, 1, 1], [], []>} : vector<8x8xf32>, vector<8x256xf32>, vector<8x256xf32> -> vector<8x256xf32>
    %c8_103 = arith.constant 8 : index
    %c0_104 = arith.constant 0 : index
    %c0_105 = arith.constant 0 : index
    %121 = vector.load %arg4[%c8_103, %c0_104, %c0_105] : memref<9x8x8xf32, #tpu.memory_space<vmem>>, vector<1x8x8xf32>
    %122 = vector.shape_cast %121 : vector<1x8x8xf32> to vector<8x8xf32>
    %cst_106 = arith.constant dense<0.000000e+00> : vector<8x256xf32>
    %123 = tpu.matmul %122, %114, %cst_106 {dimension_numbers = #tpu.dot_dimension_numbers<[1], [0], [0], [1], [0, 0, 1, 1], [], []>} : vector<8x8xf32>, vector<8x256xf32>, vector<8x256xf32> -> vector<8x256xf32>
    %124 = arith.addf %109, %117 : vector<8x256xf32>
    %125 = arith.addf %110, %120 : vector<8x256xf32>
    %126 = arith.addf %111, %123 : vector<8x256xf32>
    %127 = vector.broadcast %23 : vector<1x256xf32> to vector<8x256xf32>
    %128 = arith.mulf %124, %127 : vector<8x256xf32>
    %129 = arith.addf %125, %128 : vector<8x256xf32>
    %130 = vector.broadcast %27 : vector<1x256xf32> to vector<8x256xf32>
    %131 = arith.mulf %126, %130 : vector<8x256xf32>
    %132 = arith.addf %129, %131 : vector<8x256xf32>
    %c0_107 = arith.constant 0 : index
    %c0_108 = arith.constant 0 : index
    %133 = vector.load %arg5[%c0_107, %c0_108] : memref<8x1xf32, #tpu.memory_space<vmem>>, vector<8x1xf32>
    %134 = vector.broadcast %133 : vector<8x1xf32> to vector<8x256xf32>
    %135 = arith.addf %132, %134 : vector<8x256xf32>
    %cst_109 = arith.constant 0.000000e+00 : f32
    %136 = vector.broadcast %cst_109 : f32 to vector<8x256xf32>
    %137 = arith.maximumf %135, %136 : vector<8x256xf32>
    %c0_110 = arith.constant 0 : index
    %c0_111 = arith.constant 0 : index
    %138 = vector.load %arg6[%c0_110, %c0_111] : memref<32x8xf32, #tpu.memory_space<vmem>>, vector<32x8xf32>
    %cst_112 = arith.constant dense<0.000000e+00> : vector<32x256xf32>
    %139 = tpu.matmul %138, %137, %cst_112 {dimension_numbers = #tpu.dot_dimension_numbers<[1], [0], [0], [1], [0, 0, 1, 1], [], []>} : vector<32x8xf32>, vector<8x256xf32>, vector<32x256xf32> -> vector<32x256xf32>
    %c0_113 = arith.constant 0 : index
    %c0_114 = arith.constant 0 : index
    %140 = vector.load %arg7[%c0_113, %c0_114] : memref<32x1xf32, #tpu.memory_space<vmem>>, vector<32x1xf32>
    %141 = vector.broadcast %140 : vector<32x1xf32> to vector<32x256xf32>
    %142 = arith.addf %139, %141 : vector<32x256xf32>
    %cst_115 = arith.constant 0.000000e+00 : f32
    %143 = vector.broadcast %cst_115 : f32 to vector<32x256xf32>
    %144 = arith.maximumf %142, %143 : vector<32x256xf32>
    %145 = vector.extract_strided_slice %144 {offsets = [0, 0], sizes = [8, 256], strides = [1, 1]} : vector<32x256xf32> to vector<8x256xf32>
    %c0_116 = arith.constant 0 : index
    %c0_117 = arith.constant 0 : index
    %146 = vector.load %arg8[%c0_116, %c0_117] : memref<3x8xf32, #tpu.memory_space<vmem>>, vector<3x8xf32>
    %cst_118 = arith.constant dense<0.000000e+00> : vector<3x256xf32>
    %147 = tpu.matmul %146, %145, %cst_118 {dimension_numbers = #tpu.dot_dimension_numbers<[1], [0], [0], [1], [0, 0, 1, 1], [], []>} : vector<3x8xf32>, vector<8x256xf32>, vector<3x256xf32> -> vector<3x256xf32>
    %c0_119 = arith.constant 0 : index
    %c0_120 = arith.constant 0 : index
    %148 = vector.load %arg9[%c0_119, %c0_120] : memref<3x1xf32, #tpu.memory_space<vmem>>, vector<3x1xf32>
    %149 = vector.broadcast %148 : vector<3x1xf32> to vector<3x256xf32>
    %150 = arith.addf %147, %149 : vector<3x256xf32>
    %151 = vector.extract_strided_slice %144 {offsets = [8, 0], sizes = [8, 256], strides = [1, 1]} : vector<32x256xf32> to vector<8x256xf32>
    %c0_121 = arith.constant 0 : index
    %c0_122 = arith.constant 0 : index
    %152 = vector.load %arg8[%c0_121, %c0_122] : memref<3x8xf32, #tpu.memory_space<vmem>>, vector<3x8xf32>
    %cst_123 = arith.constant dense<0.000000e+00> : vector<3x256xf32>
    %153 = tpu.matmul %152, %151, %cst_123 {dimension_numbers = #tpu.dot_dimension_numbers<[1], [0], [0], [1], [0, 0, 1, 1], [], []>} : vector<3x8xf32>, vector<8x256xf32>, vector<3x256xf32> -> vector<3x256xf32>
    %c0_124 = arith.constant 0 : index
    %c0_125 = arith.constant 0 : index
    %154 = vector.load %arg9[%c0_124, %c0_125] : memref<3x1xf32, #tpu.memory_space<vmem>>, vector<3x1xf32>
    %155 = vector.broadcast %154 : vector<3x1xf32> to vector<3x256xf32>
    %156 = arith.addf %153, %155 : vector<3x256xf32>
    %157 = vector.extract_strided_slice %144 {offsets = [16, 0], sizes = [8, 256], strides = [1, 1]} : vector<32x256xf32> to vector<8x256xf32>
    %c0_126 = arith.constant 0 : index
    %c0_127 = arith.constant 0 : index
    %158 = vector.load %arg8[%c0_126, %c0_127] : memref<3x8xf32, #tpu.memory_space<vmem>>, vector<3x8xf32>
    %cst_128 = arith.constant dense<0.000000e+00> : vector<3x256xf32>
    %159 = tpu.matmul %158, %157, %cst_128 {dimension_numbers = #tpu.dot_dimension_numbers<[1], [0], [0], [1], [0, 0, 1, 1], [], []>} : vector<3x8xf32>, vector<8x256xf32>, vector<3x256xf32> -> vector<3x256xf32>
    %c0_129 = arith.constant 0 : index
    %c0_130 = arith.constant 0 : index
    %160 = vector.load %arg9[%c0_129, %c0_130] : memref<3x1xf32, #tpu.memory_space<vmem>>, vector<3x1xf32>
    %161 = vector.broadcast %160 : vector<3x1xf32> to vector<3x256xf32>
    %162 = arith.addf %159, %161 : vector<3x256xf32>
    %163 = vector.extract_strided_slice %144 {offsets = [24, 0], sizes = [8, 256], strides = [1, 1]} : vector<32x256xf32> to vector<8x256xf32>
    %c0_131 = arith.constant 0 : index
    %c0_132 = arith.constant 0 : index
    %164 = vector.load %arg8[%c0_131, %c0_132] : memref<3x8xf32, #tpu.memory_space<vmem>>, vector<3x8xf32>
    %cst_133 = arith.constant dense<0.000000e+00> : vector<3x256xf32>
    %165 = tpu.matmul %164, %163, %cst_133 {dimension_numbers = #tpu.dot_dimension_numbers<[1], [0], [0], [1], [0, 0, 1, 1], [], []>} : vector<3x8xf32>, vector<8x256xf32>, vector<3x256xf32> -> vector<3x256xf32>
    %c0_134 = arith.constant 0 : index
    %c0_135 = arith.constant 0 : index
    %166 = vector.load %arg9[%c0_134, %c0_135] : memref<3x1xf32, #tpu.memory_space<vmem>>, vector<3x1xf32>
    %167 = vector.broadcast %166 : vector<3x1xf32> to vector<3x256xf32>
    %168 = arith.addf %165, %167 : vector<3x256xf32>
    %169 = tpu.concatenate %150, %156, %162, %168 in 0 : vector<3x256xf32>, vector<3x256xf32>, vector<3x256xf32>, vector<3x256xf32> -> vector<12x256xf32>
    %c0_136 = arith.constant 0 : index
    %c0_137 = arith.constant 0 : index
    %c0_138 = arith.constant 0 : index
    %170 = vector.load %arg10[%c0_136, %c0_137, %c0_138] : memref<2x12x256xf32, #tpu.memory_space<vmem>>, vector<1x12x256xf32>
    %171 = vector.shape_cast %170 : vector<1x12x256xf32> to vector<12x256xf32>
    %172 = vector.shape_cast %169 : vector<12x256xf32> to vector<1x12x256xf32>
    tpu.vector_store %arg10[%c0_136, %c0_137, %c0_138], %172 {strides = array<i32>} : memref<2x12x256xf32, #tpu.memory_space<vmem>>, vector<1x12x256xf32>,
    %c1_139 = arith.constant 1 : index
    %c0_140 = arith.constant 0 : index
    %c0_141 = arith.constant 0 : index
    %173 = vector.load %arg1[%c1_139, %c0_140, %c0_141] : memref<2x4x256xf32, #tpu.memory_space<vmem>>, vector<1x4x256xf32>
    %174 = vector.shape_cast %173 : vector<1x4x256xf32> to vector<4x256xf32>
    %c0_142 = arith.constant 0 : index
    %c32_143 = arith.constant 32 : index
    %175 = vector.load %arg11[%c0_142, %c32_143] : memref<8x320xf32, #tpu.memory_space<vmem>>, vector<4x256xf32>
    tpu.vector_store %arg11[%c0_142, %c32_143], %174 {strides = array<i32>} : memref<8x320xf32, #tpu.memory_space<vmem>>, vector<4x256xf32>,
    %c0_144 = arith.constant 0 : index
    %c15_145 = arith.constant 15 : index
    %176 = vector.load %arg11[%c0_144, %c15_145] : memref<8x320xf32, #tpu.memory_space<vmem>>, vector<4x256xf32>
    %c0_146 = arith.constant 0 : index
    %c16_147 = arith.constant 16 : index
    %177 = vector.load %arg11[%c0_146, %c16_147] : memref<8x320xf32, #tpu.memory_space<vmem>>, vector<4x256xf32>
    %c0_148 = arith.constant 0 : index
    %c17_149 = arith.constant 17 : index
    %178 = vector.load %arg11[%c0_148, %c17_149] : memref<8x320xf32, #tpu.memory_space<vmem>>, vector<4x256xf32>
    %c0_150 = arith.constant 0 : index
    %c0_151 = arith.constant 0 : index
    %c0_152 = arith.constant 0 : index
    %179 = vector.load %arg2[%c0_150, %c0_151, %c0_152] : memref<9x8x4xf32, #tpu.memory_space<vmem>>, vector<1x8x4xf32>
    %180 = vector.shape_cast %179 : vector<1x8x4xf32> to vector<8x4xf32>
    %cst_153 = arith.constant dense<0.000000e+00> : vector<8x256xf32>
    %181 = tpu.matmul %180, %176, %cst_153 {dimension_numbers = #tpu.dot_dimension_numbers<[1], [0], [0], [1], [0, 0, 1, 1], [], []>} : vector<8x4xf32>, vector<4x256xf32>, vector<8x256xf32> -> vector<8x256xf32>
    %c1_154 = arith.constant 1 : index
    %c0_155 = arith.constant 0 : index
    %c0_156 = arith.constant 0 : index
    %182 = vector.load %arg2[%c1_154, %c0_155, %c0_156] : memref<9x8x4xf32, #tpu.memory_space<vmem>>, vector<1x8x4xf32>
    %183 = vector.shape_cast %182 : vector<1x8x4xf32> to vector<8x4xf32>
    %cst_157 = arith.constant dense<0.000000e+00> : vector<8x256xf32>
    %184 = tpu.matmul %183, %177, %cst_157 {dimension_numbers = #tpu.dot_dimension_numbers<[1], [0], [0], [1], [0, 0, 1, 1], [], []>} : vector<8x4xf32>, vector<4x256xf32>, vector<8x256xf32> -> vector<8x256xf32>
    %c2_158 = arith.constant 2 : index
    %c0_159 = arith.constant 0 : index
    %c0_160 = arith.constant 0 : index
    %185 = vector.load %arg2[%c2_158, %c0_159, %c0_160] : memref<9x8x4xf32, #tpu.memory_space<vmem>>, vector<1x8x4xf32>
    %186 = vector.shape_cast %185 : vector<1x8x4xf32> to vector<8x4xf32>
    %cst_161 = arith.constant dense<0.000000e+00> : vector<8x256xf32>
    %187 = tpu.matmul %186, %178, %cst_161 {dimension_numbers = #tpu.dot_dimension_numbers<[1], [0], [0], [1], [0, 0, 1, 1], [], []>} : vector<8x4xf32>, vector<4x256xf32>, vector<8x256xf32> -> vector<8x256xf32>
    %c0_162 = arith.constant 0 : index
    %c31_163 = arith.constant 31 : index
    %188 = vector.load %arg11[%c0_162, %c31_163] : memref<8x320xf32, #tpu.memory_space<vmem>>, vector<4x256xf32>
    %c0_164 = arith.constant 0 : index
    %c32_165 = arith.constant 32 : index
    %189 = vector.load %arg11[%c0_164, %c32_165] : memref<8x320xf32, #tpu.memory_space<vmem>>, vector<4x256xf32>
    %c0_166 = arith.constant 0 : index
    %c33_167 = arith.constant 33 : index
    %190 = vector.load %arg11[%c0_166, %c33_167] : memref<8x320xf32, #tpu.memory_space<vmem>>, vector<4x256xf32>
    %c3_168 = arith.constant 3 : index
    %c0_169 = arith.constant 0 : index
    %c0_170 = arith.constant 0 : index
    %191 = vector.load %arg2[%c3_168, %c0_169, %c0_170] : memref<9x8x4xf32, #tpu.memory_space<vmem>>, vector<1x8x4xf32>
    %192 = vector.shape_cast %191 : vector<1x8x4xf32> to vector<8x4xf32>
    %cst_171 = arith.constant dense<0.000000e+00> : vector<8x256xf32>
    %193 = tpu.matmul %192, %188, %cst_171 {dimension_numbers = #tpu.dot_dimension_numbers<[1], [0], [0], [1], [0, 0, 1, 1], [], []>} : vector<8x4xf32>, vector<4x256xf32>, vector<8x256xf32> -> vector<8x256xf32>
    %c4_172 = arith.constant 4 : index
    %c0_173 = arith.constant 0 : index
    %c0_174 = arith.constant 0 : index
    %194 = vector.load %arg2[%c4_172, %c0_173, %c0_174] : memref<9x8x4xf32, #tpu.memory_space<vmem>>, vector<1x8x4xf32>
    %195 = vector.shape_cast %194 : vector<1x8x4xf32> to vector<8x4xf32>
    %cst_175 = arith.constant dense<0.000000e+00> : vector<8x256xf32>
    %196 = tpu.matmul %195, %189, %cst_175 {dimension_numbers = #tpu.dot_dimension_numbers<[1], [0], [0], [1], [0, 0, 1, 1], [], []>} : vector<8x4xf32>, vector<4x256xf32>, vector<8x256xf32> -> vector<8x256xf32>
    %c5_176 = arith.constant 5 : index
    %c0_177 = arith.constant 0 : index
    %c0_178 = arith.constant 0 : index
    %197 = vector.load %arg2[%c5_176, %c0_177, %c0_178] : memref<9x8x4xf32, #tpu.memory_space<vmem>>, vector<1x8x4xf32>
    %198 = vector.shape_cast %197 : vector<1x8x4xf32> to vector<8x4xf32>
    %cst_179 = arith.constant dense<0.000000e+00> : vector<8x256xf32>
    %199 = tpu.matmul %198, %190, %cst_179 {dimension_numbers = #tpu.dot_dimension_numbers<[1], [0], [0], [1], [0, 0, 1, 1], [], []>} : vector<8x4xf32>, vector<4x256xf32>, vector<8x256xf32> -> vector<8x256xf32>
    %200 = arith.addf %181, %193 : vector<8x256xf32>
    %201 = arith.addf %184, %196 : vector<8x256xf32>
    %202 = arith.addf %187, %199 : vector<8x256xf32>
    %c0_180 = arith.constant 0 : index
    %c47_181 = arith.constant 47 : index
    %203 = vector.load %arg11[%c0_180, %c47_181] : memref<8x320xf32, #tpu.memory_space<vmem>>, vector<4x256xf32>
    %c0_182 = arith.constant 0 : index
    %c48_183 = arith.constant 48 : index
    %204 = vector.load %arg11[%c0_182, %c48_183] : memref<8x320xf32, #tpu.memory_space<vmem>>, vector<4x256xf32>
    %c0_184 = arith.constant 0 : index
    %c49_185 = arith.constant 49 : index
    %205 = vector.load %arg11[%c0_184, %c49_185] : memref<8x320xf32, #tpu.memory_space<vmem>>, vector<4x256xf32>
    %c6_186 = arith.constant 6 : index
    %c0_187 = arith.constant 0 : index
    %c0_188 = arith.constant 0 : index
    %206 = vector.load %arg2[%c6_186, %c0_187, %c0_188] : memref<9x8x4xf32, #tpu.memory_space<vmem>>, vector<1x8x4xf32>
    %207 = vector.shape_cast %206 : vector<1x8x4xf32> to vector<8x4xf32>
    %cst_189 = arith.constant dense<0.000000e+00> : vector<8x256xf32>
    %208 = tpu.matmul %207, %203, %cst_189 {dimension_numbers = #tpu.dot_dimension_numbers<[1], [0], [0], [1], [0, 0, 1, 1], [], []>} : vector<8x4xf32>, vector<4x256xf32>, vector<8x256xf32> -> vector<8x256xf32>
    %c7_190 = arith.constant 7 : index
    %c0_191 = arith.constant 0 : index
    %c0_192 = arith.constant 0 : index
    %209 = vector.load %arg2[%c7_190, %c0_191, %c0_192] : memref<9x8x4xf32, #tpu.memory_space<vmem>>, vector<1x8x4xf32>
    %210 = vector.shape_cast %209 : vector<1x8x4xf32> to vector<8x4xf32>
    %cst_193 = arith.constant dense<0.000000e+00> : vector<8x256xf32>
    %211 = tpu.matmul %210, %204, %cst_193 {dimension_numbers = #tpu.dot_dimension_numbers<[1], [0], [0], [1], [0, 0, 1, 1], [], []>} : vector<8x4xf32>, vector<4x256xf32>, vector<8x256xf32> -> vector<8x256xf32>
    %c8_194 = arith.constant 8 : index
    %c0_195 = arith.constant 0 : index
    %c0_196 = arith.constant 0 : index
    %212 = vector.load %arg2[%c8_194, %c0_195, %c0_196] : memref<9x8x4xf32, #tpu.memory_space<vmem>>, vector<1x8x4xf32>
    %213 = vector.shape_cast %212 : vector<1x8x4xf32> to vector<8x4xf32>
    %cst_197 = arith.constant dense<0.000000e+00> : vector<8x256xf32>
    %214 = tpu.matmul %213, %205, %cst_197 {dimension_numbers = #tpu.dot_dimension_numbers<[1], [0], [0], [1], [0, 0, 1, 1], [], []>} : vector<8x4xf32>, vector<4x256xf32>, vector<8x256xf32> -> vector<8x256xf32>
    %215 = arith.addf %200, %208 : vector<8x256xf32>
    %216 = arith.addf %201, %211 : vector<8x256xf32>
    %217 = arith.addf %202, %214 : vector<8x256xf32>
    %218 = vector.broadcast %23 : vector<1x256xf32> to vector<8x256xf32>
    %219 = arith.mulf %215, %218 : vector<8x256xf32>
    %220 = arith.addf %216, %219 : vector<8x256xf32>
    %221 = vector.broadcast %27 : vector<1x256xf32> to vector<8x256xf32>
    %222 = arith.mulf %217, %221 : vector<8x256xf32>
    %223 = arith.addf %220, %222 : vector<8x256xf32>
    %c0_198 = arith.constant 0 : index
    %c0_199 = arith.constant 0 : index
    %224 = vector.load %arg3[%c0_198, %c0_199] : memref<8x1xf32, #tpu.memory_space<vmem>>, vector<8x1xf32>
    %225 = vector.broadcast %224 : vector<8x1xf32> to vector<8x256xf32>
    %226 = arith.addf %223, %225 : vector<8x256xf32>
    %cst_200 = arith.constant 0.000000e+00 : f32
    %227 = vector.broadcast %cst_200 : f32 to vector<8x256xf32>
    %228 = arith.maximumf %226, %227 : vector<8x256xf32>
    %c0_201 = arith.constant 0 : index
    %c32_202 = arith.constant 32 : index
    %229 = vector.load %arg11[%c0_201, %c32_202] : memref<8x320xf32, #tpu.memory_space<vmem>>, vector<8x256xf32>
    tpu.vector_store %arg11[%c0_201, %c32_202], %228 {strides = array<i32>} : memref<8x320xf32, #tpu.memory_space<vmem>>, vector<8x256xf32>,
    %c0_203 = arith.constant 0 : index
    %c15_204 = arith.constant 15 : index
    %230 = vector.load %arg11[%c0_203, %c15_204] : memref<8x320xf32, #tpu.memory_space<vmem>>, vector<8x256xf32>
    %c0_205 = arith.constant 0 : index
    %c16_206 = arith.constant 16 : index
    %231 = vector.load %arg11[%c0_205, %c16_206] : memref<8x320xf32, #tpu.memory_space<vmem>>, vector<8x256xf32>
    %c0_207 = arith.constant 0 : index
    %c17_208 = arith.constant 17 : index
    %232 = vector.load %arg11[%c0_207, %c17_208] : memref<8x320xf32, #tpu.memory_space<vmem>>, vector<8x256xf32>
    %c0_209 = arith.constant 0 : index
    %c0_210 = arith.constant 0 : index
    %c0_211 = arith.constant 0 : index
    %233 = vector.load %arg4[%c0_209, %c0_210, %c0_211] : memref<9x8x8xf32, #tpu.memory_space<vmem>>, vector<1x8x8xf32>
    %234 = vector.shape_cast %233 : vector<1x8x8xf32> to vector<8x8xf32>
    %cst_212 = arith.constant dense<0.000000e+00> : vector<8x256xf32>
    %235 = tpu.matmul %234, %230, %cst_212 {dimension_numbers = #tpu.dot_dimension_numbers<[1], [0], [0], [1], [0, 0, 1, 1], [], []>} : vector<8x8xf32>, vector<8x256xf32>, vector<8x256xf32> -> vector<8x256xf32>
    %c1_213 = arith.constant 1 : index
    %c0_214 = arith.constant 0 : index
    %c0_215 = arith.constant 0 : index
    %236 = vector.load %arg4[%c1_213, %c0_214, %c0_215] : memref<9x8x8xf32, #tpu.memory_space<vmem>>, vector<1x8x8xf32>
    %237 = vector.shape_cast %236 : vector<1x8x8xf32> to vector<8x8xf32>
    %cst_216 = arith.constant dense<0.000000e+00> : vector<8x256xf32>
    %238 = tpu.matmul %237, %231, %cst_216 {dimension_numbers = #tpu.dot_dimension_numbers<[1], [0], [0], [1], [0, 0, 1, 1], [], []>} : vector<8x8xf32>, vector<8x256xf32>, vector<8x256xf32> -> vector<8x256xf32>
    %c2_217 = arith.constant 2 : index
    %c0_218 = arith.constant 0 : index
    %c0_219 = arith.constant 0 : index
    %239 = vector.load %arg4[%c2_217, %c0_218, %c0_219] : memref<9x8x8xf32, #tpu.memory_space<vmem>>, vector<1x8x8xf32>
    %240 = vector.shape_cast %239 : vector<1x8x8xf32> to vector<8x8xf32>
    %cst_220 = arith.constant dense<0.000000e+00> : vector<8x256xf32>
    %241 = tpu.matmul %240, %232, %cst_220 {dimension_numbers = #tpu.dot_dimension_numbers<[1], [0], [0], [1], [0, 0, 1, 1], [], []>} : vector<8x8xf32>, vector<8x256xf32>, vector<8x256xf32> -> vector<8x256xf32>
    %c0_221 = arith.constant 0 : index
    %c31_222 = arith.constant 31 : index
    %242 = vector.load %arg11[%c0_221, %c31_222] : memref<8x320xf32, #tpu.memory_space<vmem>>, vector<8x256xf32>
    %c0_223 = arith.constant 0 : index
    %c32_224 = arith.constant 32 : index
    %243 = vector.load %arg11[%c0_223, %c32_224] : memref<8x320xf32, #tpu.memory_space<vmem>>, vector<8x256xf32>
    %c0_225 = arith.constant 0 : index
    %c33_226 = arith.constant 33 : index
    %244 = vector.load %arg11[%c0_225, %c33_226] : memref<8x320xf32, #tpu.memory_space<vmem>>, vector<8x256xf32>
    %c3_227 = arith.constant 3 : index
    %c0_228 = arith.constant 0 : index
    %c0_229 = arith.constant 0 : index
    %245 = vector.load %arg4[%c3_227, %c0_228, %c0_229] : memref<9x8x8xf32, #tpu.memory_space<vmem>>, vector<1x8x8xf32>
    %246 = vector.shape_cast %245 : vector<1x8x8xf32> to vector<8x8xf32>
    %cst_230 = arith.constant dense<0.000000e+00> : vector<8x256xf32>
    %247 = tpu.matmul %246, %242, %cst_230 {dimension_numbers = #tpu.dot_dimension_numbers<[1], [0], [0], [1], [0, 0, 1, 1], [], []>} : vector<8x8xf32>, vector<8x256xf32>, vector<8x256xf32> -> vector<8x256xf32>
    %c4_231 = arith.constant 4 : index
    %c0_232 = arith.constant 0 : index
    %c0_233 = arith.constant 0 : index
    %248 = vector.load %arg4[%c4_231, %c0_232, %c0_233] : memref<9x8x8xf32, #tpu.memory_space<vmem>>, vector<1x8x8xf32>
    %249 = vector.shape_cast %248 : vector<1x8x8xf32> to vector<8x8xf32>
    %cst_234 = arith.constant dense<0.000000e+00> : vector<8x256xf32>
    %250 = tpu.matmul %249, %243, %cst_234 {dimension_numbers = #tpu.dot_dimension_numbers<[1], [0], [0], [1], [0, 0, 1, 1], [], []>} : vector<8x8xf32>, vector<8x256xf32>, vector<8x256xf32> -> vector<8x256xf32>
    %c5_235 = arith.constant 5 : index
    %c0_236 = arith.constant 0 : index
    %c0_237 = arith.constant 0 : index
    %251 = vector.load %arg4[%c5_235, %c0_236, %c0_237] : memref<9x8x8xf32, #tpu.memory_space<vmem>>, vector<1x8x8xf32>
    %252 = vector.shape_cast %251 : vector<1x8x8xf32> to vector<8x8xf32>
    %cst_238 = arith.constant dense<0.000000e+00> : vector<8x256xf32>
    %253 = tpu.matmul %252, %244, %cst_238 {dimension_numbers = #tpu.dot_dimension_numbers<[1], [0], [0], [1], [0, 0, 1, 1], [], []>} : vector<8x8xf32>, vector<8x256xf32>, vector<8x256xf32> -> vector<8x256xf32>
    %254 = arith.addf %235, %247 : vector<8x256xf32>
    %255 = arith.addf %238, %250 : vector<8x256xf32>
    %256 = arith.addf %241, %253 : vector<8x256xf32>
    %c0_239 = arith.constant 0 : index
    %c47_240 = arith.constant 47 : index
    %257 = vector.load %arg11[%c0_239, %c47_240] : memref<8x320xf32, #tpu.memory_space<vmem>>, vector<8x256xf32>
    %c0_241 = arith.constant 0 : index
    %c48_242 = arith.constant 48 : index
    %258 = vector.load %arg11[%c0_241, %c48_242] : memref<8x320xf32, #tpu.memory_space<vmem>>, vector<8x256xf32>
    %c0_243 = arith.constant 0 : index
    %c49_244 = arith.constant 49 : index
    %259 = vector.load %arg11[%c0_243, %c49_244] : memref<8x320xf32, #tpu.memory_space<vmem>>, vector<8x256xf32>
    %c6_245 = arith.constant 6 : index
    %c0_246 = arith.constant 0 : index
    %c0_247 = arith.constant 0 : index
    %260 = vector.load %arg4[%c6_245, %c0_246, %c0_247] : memref<9x8x8xf32, #tpu.memory_space<vmem>>, vector<1x8x8xf32>
    %261 = vector.shape_cast %260 : vector<1x8x8xf32> to vector<8x8xf32>
    %cst_248 = arith.constant dense<0.000000e+00> : vector<8x256xf32>
    %262 = tpu.matmul %261, %257, %cst_248 {dimension_numbers = #tpu.dot_dimension_numbers<[1], [0], [0], [1], [0, 0, 1, 1], [], []>} : vector<8x8xf32>, vector<8x256xf32>, vector<8x256xf32> -> vector<8x256xf32>
    %c7_249 = arith.constant 7 : index
    %c0_250 = arith.constant 0 : index
    %c0_251 = arith.constant 0 : index
    %263 = vector.load %arg4[%c7_249, %c0_250, %c0_251] : memref<9x8x8xf32, #tpu.memory_space<vmem>>, vector<1x8x8xf32>
    %264 = vector.shape_cast %263 : vector<1x8x8xf32> to vector<8x8xf32>
    %cst_252 = arith.constant dense<0.000000e+00> : vector<8x256xf32>
    %265 = tpu.matmul %264, %258, %cst_252 {dimension_numbers = #tpu.dot_dimension_numbers<[1], [0], [0], [1], [0, 0, 1, 1], [], []>} : vector<8x8xf32>, vector<8x256xf32>, vector<8x256xf32> -> vector<8x256xf32>
    %c8_253 = arith.constant 8 : index
    %c0_254 = arith.constant 0 : index
    %c0_255 = arith.constant 0 : index
    %266 = vector.load %arg4[%c8_253, %c0_254, %c0_255] : memref<9x8x8xf32, #tpu.memory_space<vmem>>, vector<1x8x8xf32>
    %267 = vector.shape_cast %266 : vector<1x8x8xf32> to vector<8x8xf32>
    %cst_256 = arith.constant dense<0.000000e+00> : vector<8x256xf32>
    %268 = tpu.matmul %267, %259, %cst_256 {dimension_numbers = #tpu.dot_dimension_numbers<[1], [0], [0], [1], [0, 0, 1, 1], [], []>} : vector<8x8xf32>, vector<8x256xf32>, vector<8x256xf32> -> vector<8x256xf32>
    %269 = arith.addf %254, %262 : vector<8x256xf32>
    %270 = arith.addf %255, %265 : vector<8x256xf32>
    %271 = arith.addf %256, %268 : vector<8x256xf32>
    %272 = vector.broadcast %23 : vector<1x256xf32> to vector<8x256xf32>
    %273 = arith.mulf %269, %272 : vector<8x256xf32>
    %274 = arith.addf %270, %273 : vector<8x256xf32>
    %275 = vector.broadcast %27 : vector<1x256xf32> to vector<8x256xf32>
    %276 = arith.mulf %271, %275 : vector<8x256xf32>
    %277 = arith.addf %274, %276 : vector<8x256xf32>
    %c0_257 = arith.constant 0 : index
    %c0_258 = arith.constant 0 : index
    %278 = vector.load %arg5[%c0_257, %c0_258] : memref<8x1xf32, #tpu.memory_space<vmem>>, vector<8x1xf32>
    %279 = vector.broadcast %278 : vector<8x1xf32> to vector<8x256xf32>
    %280 = arith.addf %277, %279 : vector<8x256xf32>
    %cst_259 = arith.constant 0.000000e+00 : f32
    %281 = vector.broadcast %cst_259 : f32 to vector<8x256xf32>
    %282 = arith.maximumf %280, %281 : vector<8x256xf32>
    %c0_260 = arith.constant 0 : index
    %c0_261 = arith.constant 0 : index
    %283 = vector.load %arg6[%c0_260, %c0_261] : memref<32x8xf32, #tpu.memory_space<vmem>>, vector<32x8xf32>
    %cst_262 = arith.constant dense<0.000000e+00> : vector<32x256xf32>
    %284 = tpu.matmul %283, %282, %cst_262 {dimension_numbers = #tpu.dot_dimension_numbers<[1], [0], [0], [1], [0, 0, 1, 1], [], []>} : vector<32x8xf32>, vector<8x256xf32>, vector<32x256xf32> -> vector<32x256xf32>
    %c0_263 = arith.constant 0 : index
    %c0_264 = arith.constant 0 : index
    %285 = vector.load %arg7[%c0_263, %c0_264] : memref<32x1xf32, #tpu.memory_space<vmem>>, vector<32x1xf32>
    %286 = vector.broadcast %285 : vector<32x1xf32> to vector<32x256xf32>
    %287 = arith.addf %284, %286 : vector<32x256xf32>
    %cst_265 = arith.constant 0.000000e+00 : f32
    %288 = vector.broadcast %cst_265 : f32 to vector<32x256xf32>
    %289 = arith.maximumf %287, %288 : vector<32x256xf32>
    %290 = vector.extract_strided_slice %289 {offsets = [0, 0], sizes = [8, 256], strides = [1, 1]} : vector<32x256xf32> to vector<8x256xf32>
    %c0_266 = arith.constant 0 : index
    %c0_267 = arith.constant 0 : index
    %291 = vector.load %arg8[%c0_266, %c0_267] : memref<3x8xf32, #tpu.memory_space<vmem>>, vector<3x8xf32>
    %cst_268 = arith.constant dense<0.000000e+00> : vector<3x256xf32>
    %292 = tpu.matmul %291, %290, %cst_268 {dimension_numbers = #tpu.dot_dimension_numbers<[1], [0], [0], [1], [0, 0, 1, 1], [], []>} : vector<3x8xf32>, vector<8x256xf32>, vector<3x256xf32> -> vector<3x256xf32>
    %c0_269 = arith.constant 0 : index
    %c0_270 = arith.constant 0 : index
    %293 = vector.load %arg9[%c0_269, %c0_270] : memref<3x1xf32, #tpu.memory_space<vmem>>, vector<3x1xf32>
    %294 = vector.broadcast %293 : vector<3x1xf32> to vector<3x256xf32>
    %295 = arith.addf %292, %294 : vector<3x256xf32>
    %296 = vector.extract_strided_slice %289 {offsets = [8, 0], sizes = [8, 256], strides = [1, 1]} : vector<32x256xf32> to vector<8x256xf32>
    %c0_271 = arith.constant 0 : index
    %c0_272 = arith.constant 0 : index
    %297 = vector.load %arg8[%c0_271, %c0_272] : memref<3x8xf32, #tpu.memory_space<vmem>>, vector<3x8xf32>
    %cst_273 = arith.constant dense<0.000000e+00> : vector<3x256xf32>
    %298 = tpu.matmul %297, %296, %cst_273 {dimension_numbers = #tpu.dot_dimension_numbers<[1], [0], [0], [1], [0, 0, 1, 1], [], []>} : vector<3x8xf32>, vector<8x256xf32>, vector<3x256xf32> -> vector<3x256xf32>
    %c0_274 = arith.constant 0 : index
    %c0_275 = arith.constant 0 : index
    %299 = vector.load %arg9[%c0_274, %c0_275] : memref<3x1xf32, #tpu.memory_space<vmem>>, vector<3x1xf32>
    %300 = vector.broadcast %299 : vector<3x1xf32> to vector<3x256xf32>
    %301 = arith.addf %298, %300 : vector<3x256xf32>
    %302 = vector.extract_strided_slice %289 {offsets = [16, 0], sizes = [8, 256], strides = [1, 1]} : vector<32x256xf32> to vector<8x256xf32>
    %c0_276 = arith.constant 0 : index
    %c0_277 = arith.constant 0 : index
    %303 = vector.load %arg8[%c0_276, %c0_277] : memref<3x8xf32, #tpu.memory_space<vmem>>, vector<3x8xf32>
    %cst_278 = arith.constant dense<0.000000e+00> : vector<3x256xf32>
    %304 = tpu.matmul %303, %302, %cst_278 {dimension_numbers = #tpu.dot_dimension_numbers<[1], [0], [0], [1], [0, 0, 1, 1], [], []>} : vector<3x8xf32>, vector<8x256xf32>, vector<3x256xf32> -> vector<3x256xf32>
    %c0_279 = arith.constant 0 : index
    %c0_280 = arith.constant 0 : index
    %305 = vector.load %arg9[%c0_279, %c0_280] : memref<3x1xf32, #tpu.memory_space<vmem>>, vector<3x1xf32>
    %306 = vector.broadcast %305 : vector<3x1xf32> to vector<3x256xf32>
    %307 = arith.addf %304, %306 : vector<3x256xf32>
    %308 = vector.extract_strided_slice %289 {offsets = [24, 0], sizes = [8, 256], strides = [1, 1]} : vector<32x256xf32> to vector<8x256xf32>
    %c0_281 = arith.constant 0 : index
    %c0_282 = arith.constant 0 : index
    %309 = vector.load %arg8[%c0_281, %c0_282] : memref<3x8xf32, #tpu.memory_space<vmem>>, vector<3x8xf32>
    %cst_283 = arith.constant dense<0.000000e+00> : vector<3x256xf32>
    %310 = tpu.matmul %309, %308, %cst_283 {dimension_numbers = #tpu.dot_dimension_numbers<[1], [0], [0], [1], [0, 0, 1, 1], [], []>} : vector<3x8xf32>, vector<8x256xf32>, vector<3x256xf32> -> vector<3x256xf32>
    %c0_284 = arith.constant 0 : index
    %c0_285 = arith.constant 0 : index
    %311 = vector.load %arg9[%c0_284, %c0_285] : memref<3x1xf32, #tpu.memory_space<vmem>>, vector<3x1xf32>
    %312 = vector.broadcast %311 : vector<3x1xf32> to vector<3x256xf32>
    %313 = arith.addf %310, %312 : vector<3x256xf32>
    %314 = tpu.concatenate %295, %301, %307, %313 in 0 : vector<3x256xf32>, vector<3x256xf32>, vector<3x256xf32>, vector<3x256xf32> -> vector<12x256xf32>
    %c1_286 = arith.constant 1 : index
    %c0_287 = arith.constant 0 : index
    %c0_288 = arith.constant 0 : index
    %315 = vector.load %arg10[%c1_286, %c0_287, %c0_288] : memref<2x12x256xf32, #tpu.memory_space<vmem>>, vector<1x12x256xf32>
    %316 = vector.shape_cast %315 : vector<1x12x256xf32> to vector<12x256xf32>
    %317 = vector.shape_cast %314 : vector<12x256xf32> to vector<1x12x256xf32>
    tpu.vector_store %arg10[%c1_286, %c0_287, %c0_288], %317 {strides = array<i32>} : memref<2x12x256xf32, #tpu.memory_space<vmem>>, vector<1x12x256xf32>,
    return
  }
  func.func @transform_0(%arg0: i32) -> (i32, i32, i32) {
    %c0_i32 = arith.constant 0 : i32
    %c0_i32_0 = arith.constant 0 : i32
    %c0_i32_1 = arith.constant 0 : i32
    return %arg0, %c0_i32, %c0_i32_0 : i32, i32, i32
  }
  func.func @transform_1(%arg0: i32) -> (i32, i32, i32) {
    %c0_i32 = arith.constant 0 : i32
    %c0_i32_0 = arith.constant 0 : i32
    %c0_i32_1 = arith.constant 0 : i32
    %c0_i32_2 = arith.constant 0 : i32
    return %c0_i32, %c0_i32_0, %c0_i32_1 : i32, i32, i32
  }
  func.func @transform_2(%arg0: i32) -> (i32, i32) {
    %c0_i32 = arith.constant 0 : i32
    %c0_i32_0 = arith.constant 0 : i32
    %c0_i32_1 = arith.constant 0 : i32
    return %c0_i32, %c0_i32_0 : i32, i32
  }
  func.func @transform_3(%arg0: i32) -> (i32, i32, i32) {
    %c0_i32 = arith.constant 0 : i32
    %c0_i32_0 = arith.constant 0 : i32
    %c0_i32_1 = arith.constant 0 : i32
    %c0_i32_2 = arith.constant 0 : i32
    return %c0_i32, %c0_i32_0, %c0_i32_1 : i32, i32, i32
  }
  func.func @transform_4(%arg0: i32) -> (i32, i32) {
    %c0_i32 = arith.constant 0 : i32
    %c0_i32_0 = arith.constant 0 : i32
    %c0_i32_1 = arith.constant 0 : i32
    return %c0_i32, %c0_i32_0 : i32, i32
  }
  func.func @transform_5(%arg0: i32) -> (i32, i32) {
    %c0_i32 = arith.constant 0 : i32
    %c0_i32_0 = arith.constant 0 : i32
    %c0_i32_1 = arith.constant 0 : i32
    return %c0_i32, %c0_i32_0 : i32, i32
  }
  func.func @transform_6(%arg0: i32) -> (i32, i32) {
    %c0_i32 = arith.constant 0 : i32
    %c0_i32_0 = arith.constant 0 : i32
    %c0_i32_1 = arith.constant 0 : i32
    return %c0_i32, %c0_i32_0 : i32, i32
  }
  func.func @transform_7(%arg0: i32) -> (i32, i32) {
    %c0_i32 = arith.constant 0 : i32
    %c0_i32_0 = arith.constant 0 : i32
    %c0_i32_1 = arith.constant 0 : i32
    return %c0_i32, %c0_i32_0 : i32, i32
  }
  func.func @transform_8(%arg0: i32) -> (i32, i32) {
    %c0_i32 = arith.constant 0 : i32
    %c0_i32_0 = arith.constant 0 : i32
    %c0_i32_1 = arith.constant 0 : i32
    return %c0_i32, %c0_i32_0 : i32, i32
  }
  func.func @transform_9(%arg0: i32) -> (i32, i32, i32) {
    %c0_i32 = arith.constant 0 : i32
    %c0_i32_0 = arith.constant 0 : i32
    %c0_i32_1 = arith.constant 0 : i32
    return %arg0, %c0_i32, %c0_i32_0 : i32, i32, i32
  }
}

</mosaic_0001>

<bundles_post_ra>
// kernel: mask_head_forward.1
= control target key start
LH: loop header
LB: loop body
LE: loop exit
PB: predicated region body
PF: predicated region fallthrough
CT: control target
= control target key end

     0   :  { %14 = vsyncpa [#allocation4], 0  ;;  %s3209_s12 = smov [#allocation3]   ;;  %s3981_s0 = inlined_call_operand.vmem [shape: f32[2,4,256], index: 0, kind: input, shape index: {}]   ;;  %s3982_s1 = inlined_call_operand.vmem [shape: f32[9,8,4], index: 1, kind: input, shape index: {}]   ;;  %s3983_s2 = inlined_call_operand.vmem [shape: f32[8,1], index: 2, kind: input, shape index: {}]   ;;  %s3984_s3 = inlined_call_operand.vmem [shape: f32[9,8,8], index: 3, kind: input, shape index: {}]   ;;  %s3985_s4 = inlined_call_operand.vmem [shape: f32[8,1], index: 4, kind: input, shape index: {}]   ;;  %s3986_s5 = inlined_call_operand.vmem [shape: f32[32,8], index: 5, kind: input, shape index: {}]   ;;  %s3987_s6 = inlined_call_operand.vmem [shape: f32[32,1], index: 6, kind: input, shape index: {}]   ;;  %s3988_s7 = inlined_call_operand.hbm [shape: f32[3,8], index: 7, kind: input, shape index: {}]   ;;  %s3989_s8 = inlined_call_operand.vmem [shape: f32[3,1], index: 8, kind: input, shape index: {}]   ;;  %s3990_s9 = inlined_call_operand.vmem [shape: f32[2,12,256], index: 9, kind: output, shape index: {}]  }
   0x1   :  { %s34_s11 = sshll.u32 %s3988_s7, 4  ;;  %s36_s13 = sshll.u32 %s3209_s12, 4  ;;  %s35_s11 = int_to_ptr.hbm [resolvable:$true] %s34_s11  ;;  %s37_s13 = int_to_ptr.vmem [resolvable:$true] %s36_s13 }
   0x2   :  { %39 = dma.hbm_to_vmem [thread:$0]  %s35_s11, 64, %s37_s13, [#allocation4]  }
   0x3   :  { %3207 = dma.done.wait [#allocation4], 64  }
   0x4   :  { %3208 = vsyncadd [#allocation4], 4294967232  ;;  %vm46_vm0 = vcmask 261120   ;;  %v3210_v0 = vmov 0.0   ;;  %v89_v1 = vld [vmem:[%s3981_s0] sm:$0xff]  ;;  %v2986_v2 = vld [vmem:[%s3981_s0 + $0x8] sm:$0xff] }
   0x5   :  { %47 = vst.msk [vmem:[#allocation2] sm:$0xff] %vm46_vm0, %v3210_v0  ;;  %s3211_s7 = smov 32   ;;  %vm48_vm1 = vcmask 523520   ;;  %vm102_vm2 = vcmask 1043712   ;;  %vm105_vm3 = vcmask 257024   ;;  %s3212_s0 = smov 97  }
   0x6   :  { %91 = vst [vmem:[#allocation1] ss:$2 sm:$0xff] %v89_v1  ;;  %s3213_s18 = smov 96   ;;  %s3214_s19 = smov 95   ;;  %vm186_vm4 = vcmask 785408   ;;  %vm3992_vm5 = vcmask 1043456  }
   0x7   :  { %49 = vst.msk [vmem:[#allocation2 + $0x10] sm:$0xff] %vm48_vm1, %v3210_v0  ;;  %s3215_s20 = smov 113   ;;  %s3216_s21 = smov 112   ;;  %vm3991_vm6 = vcmask 31744   ;;  %v3319_v17 = vld [vmem:[%s3982_s1 + $0x20] sm:$0xff]  ;;  %vm3993_vm7 = vcmask 924672  }
   0x8   :  { %s3217_s22 = smov 111   ;;  %s3218_s23 = smov 81   ;;  %v3332_v26 = vld [vmem:[%s3982_s1] sm:$0xff]  ;;  %vm126_vm8 = vcmask 793600   ;;  %vm3996_vm9 = vcmask 908288   ;;  %v3345_v33 = vld [vmem:[%s3982_s1 + $0x18] sm:$0xff] }
   0x9   :  { %s3219_s24 = smov 80   ;;  %s3220_s25 = smov 79   ;;  %vm244_vm10 = vcmask 777216   ;;  %vm356_vm11 = vcmask 916480   ;;  %v3361_v40 = vld [vmem:[%s3982_s1 + $0x10] sm:$0xff]  ;;  %v3372_v44 = vld [vmem:[%s3983_s2] sm:$0xff] }
   0xa   :  { %vm470_vm12 = vcmask 662528   ;;  %v3221_v45 = vmov 0   ;;  %v3380_v47 = vld [vmem:[%s3982_s1 + $0x28] sm:$0xff]  ;;  %vm3994_vm13 = vcmask 654336   ;;  %v3404_v57 = vld [vmem:[%s3982_s1 + $0x38] sm:$0xff]  ;;  %vm3995_vm14 = vcmask 646144  }
   0xb   :  { %3090 = vset.pattern.permute.xlu2 %v3221_v45  ;;  %3137 = vset.pattern.permute.xlu1 %v3221_v45  ;;  %v3396_v53 = vld [vmem:[%s3982_s1 + $0x8] sm:$0xff]  ;;  %v3416_v59 = vld [vmem:[%s3982_s1 + $0x30] sm:$0xff] }
   0xc   :  { %3136 = vset.pattern.permute.xlu0 %v3221_v45 }
   0xd   :  { %v92_v3 = vld.sshfl [vmem:[#allocation1] sm:$0xff pattern:$0x75316420]  ;;  %v93_v4 = vld.sshfl [vmem:[#allocation1 + $0x8] sm:$0xff pattern:$0x75316420] }
   0xe   :  { %94 = vrot.lane.b32.xlu0 %v92_v3, %s3211_s7  ;;  %1509 = vst [vmem:[#allocation1] ss:$2 sm:$0xff] %v2986_v2  ;;  %v3431_v2 = vld [vmem:[%s3982_s1 + $0x40] sm:$0xff] }
  0x16   :  { %96 = vrot.lane.b32.xlu0 %v93_v4, %s3211_s7 }
  0x80   :  { %v95_v5 = vpop.permute.xlu0 %94 }
  0x81   :  { %103 = vst.msk [vmem:[#allocation2] sm:$0xf] %vm102_vm2, %v95_v5 }
  0x88   :  { %v97_v6 = vpop.permute.xlu0 %96  ;;  %v107_v7 = vld [vmem:[#allocation2] sm:$0xf] }
  0x89   :  { %v98_v8 = vsel %vm46_vm0, %v95_v5, %v97_v6  ;;  %106 = vst.msk [vmem:[#allocation2 + $0x10] sm:$0xf] %vm105_vm3, %v97_v6  ;;  %120 = vrot.lane.b32.xlu1 %v107_v7, %s3212_s0 }
  0x8a   :  { %104 = vst [vmem:[#allocation2 + $0x8] sm:$0xf] %v98_v8 }
  0x90   :  { %v109_v9 = vld [vmem:[#allocation2 + $0x10] sm:$0xf] }
  0x91   :  { %124 = vrot.lane.b32.xlu2 %v109_v9, %s3212_s0  ;;  %184 = vrot.lane.b32.xlu1 %v109_v9, %s3213_s18  ;;  %v108_v10 = vld [vmem:[#allocation2 + $0x8] sm:$0xf] }
  0x92   :  { %182 = vrot.lane.b32.xlu0 %v108_v10, %s3213_s18 }
  0x99   :  { %180 = vrot.lane.b32.xlu2 %v107_v7, %s3213_s18  ;;  %242 = vrot.lane.b32.xlu1 %v109_v9, %s3214_s19 }
  0x9a   :  { %240 = vrot.lane.b32.xlu0 %v108_v10, %s3214_s19 }
  0xa1   :  { %238 = vrot.lane.b32.xlu2 %v107_v7, %s3214_s19  ;;  %298 = vrot.lane.b32.xlu1 %v109_v9, %s3215_s20 }
  0xa2   :  { %296 = vrot.lane.b32.xlu0 %v108_v10, %s3215_s20 }
  0xa9   :  { %294 = vrot.lane.b32.xlu2 %v107_v7, %s3215_s20  ;;  %354 = vrot.lane.b32.xlu1 %v109_v9, %s3216_s21 }
  0xaa   :  { %352 = vrot.lane.b32.xlu0 %v108_v10, %s3216_s21 }
  0xb1   :  { %350 = vrot.lane.b32.xlu2 %v107_v7, %s3216_s21  ;;  %122 = vrot.lane.b32.xlu1 %v108_v10, %s3212_s0 }
  0xb2   :  { %408 = vrot.lane.b32.xlu0 %v108_v10, %s3217_s22 }
  0xb9   :  { %406 = vrot.lane.b32.xlu2 %v107_v7, %s3217_s22  ;;  %410 = vrot.lane.b32.xlu1 %v109_v9, %s3217_s22 }
  0xba   :  { %466 = vrot.lane.b32.xlu0 %v108_v10, %s3218_s23 }
  0xc1   :  { %464 = vrot.lane.b32.xlu2 %v107_v7, %s3218_s23  ;;  %468 = vrot.lane.b32.xlu1 %v109_v9, %s3218_s23 }
  0xc2   :  { %524 = vrot.lane.b32.xlu0 %v108_v10, %s3219_s24 }
  0xc9   :  { %522 = vrot.lane.b32.xlu2 %v107_v7, %s3219_s24  ;;  %526 = vrot.lane.b32.xlu1 %v109_v9, %s3219_s24 }
  0xca   :  { %582 = vrot.lane.b32.xlu0 %v108_v10, %s3220_s25 }
  0xd1   :  { %580 = vrot.lane.b32.xlu2 %v107_v7, %s3220_s25  ;;  %584 = vrot.lane.b32.xlu1 %v109_v9, %s3220_s25 }
  0xd9   :  { %653 = vperm.xlu2 %3090, %v3372_v44  }
  0xeb   :  { %v125_v11 = vpop.permute.xlu2 %124 }
  0xf3   :  { %v181_v12 = vpop.permute.xlu2 %180 }
  0xfb   :  { %v121_v13 = vpop.permute.xlu1 %120  ;;  %v239_v14 = vpop.permute.xlu2 %238 }
 0x103   :  { %v185_v15 = vpop.permute.xlu1 %184  ;;  %v295_v20 = vpop.permute.xlu2 %294 }
 0x104   :  { %v183_v16 = vpop.permute.xlu0 %182 }
 0x105   :  { %v187_v18 = vsel %vm186_vm4, %v181_v12, %v183_v16  ;;  %v188_v19 = vsel %vm186_vm4, %v183_v16, %v185_v15 }
 0x106   :  { %2908 = vmatpush.msk.msra.mxu2 %vm3992_vm5, %v187_v18  ;;  %2910 = vmatpush.msk.msra.mxu3 %vm3992_vm5, %v188_v19 }
 0x107   :  { %2911 = vmatmul.msk.f32.vlgmr.msra.gmra.mxu3 %vm3991_vm6, %v3319_v17  ;;  %2909 = vmatmul.msk.f32.vlgmr.msra.gmra.mxu2 %vm3991_vm6, %v3319_v17 }
 0x10b   :  { %v243_v21 = vpop.permute.xlu1 %242  ;;  %v351_v24 = vpop.permute.xlu2 %350 }
 0x10c   :  { %v241_v22 = vpop.permute.xlu0 %240 }
 0x10d   :  { %v245_v38 = vsel %vm244_vm10, %v239_v14, %v241_v22  ;;  %v246_v39 = vsel %vm244_vm10, %v241_v22, %v243_v21 }
 0x113   :  { %v299_v23 = vpop.permute.xlu1 %298  ;;  %v407_v31 = vpop.permute.xlu2 %406 }
 0x114   :  { %v297_v25 = vpop.permute.xlu0 %296 }
 0x115   :  { %v301_v27 = vsel %vm3993_vm7, %v295_v20, %v297_v25  ;;  %v302_v28 = vsel %vm3993_vm7, %v297_v25, %v299_v23 }
 0x116   :  { %2917 = vmatpush.msk.msrb.mxu2 %vm3992_vm5, %v301_v27  ;;  %2919 = vmatpush.msk.msrb.mxu3 %vm3992_vm5, %v302_v28 }
 0x117   :  { %2920 = vmatmul.msk.f32.vlgmr.msrb.gmra.mxu3 %vm3991_vm6, %v3332_v26  ;;  %2918 = vmatmul.msk.f32.vlgmr.msrb.gmra.mxu2 %vm3991_vm6, %v3332_v26 }
 0x11b   :  { %v355_v29 = vpop.permute.xlu1 %354  ;;  %v465_v42 = vpop.permute.xlu2 %464 }
 0x11c   :  { %v353_v30 = vpop.permute.xlu0 %352 }
 0x11d   :  { %v357_v41 = vsel %vm356_vm11, %v351_v24, %v353_v30  ;;  %v358_v43 = vsel %vm356_vm11, %v353_v30, %v355_v29 }
 0x123   :  { %v123_v32 = vpop.permute.xlu1 %122  ;;  %v523_v51 = vpop.permute.xlu2 %522 }
 0x124   :  { %v409_v34 = vpop.permute.xlu0 %408  ;;  %v127_v35 = vsel %vm126_vm8, %v121_v13, %v123_v32  ;;  %v128_v36 = vsel %vm126_vm8, %v123_v32, %v125_v11  ;;  %v50_v11 = vlaneseq }
 0x125   :  { %v413_v37 = vsel %vm3996_vm9, %v407_v31, %v409_v34  ;;  %2903 = vmatpush.msk.msra.mxu0 %vm3992_vm5, %v127_v35  ;;  %2905 = vmatpush.msk.msra.mxu1 %vm3992_vm5, %v128_v36 }
 0x126   :  { %2904 = vmatmul.msk.f32.vlgmr.msra.gmra.mxu0 %vm3991_vm6, %v3345_v33  ;;  %2906 = vmatmul.msk.f32.vlgmr.msra.gmra.mxu1 %vm3991_vm6, %v3345_v33  ;;  %v51_v15 = vand.u32 127, %v50_v11  ;;  %v1511_v11 = vld.sshfl [vmem:[#allocation1 + $0x8] sm:$0xff pattern:$0x75316420] }
 0x127   :  { %2913 = vmatpush.msk.msrb.mxu0 %vm3992_vm5, %v245_v38  ;;  %2915 = vmatpush.msk.msrb.mxu1 %vm3992_vm5, %v246_v39 }
 0x128   :  { %2925 = vmatpush.msk.msra.mxu2 %vm3992_vm5, %v413_v37  ;;  %v52_v18 = vadd.s32 128, %v51_v15  ;;  %v57_v19 = vand.u32 15, %v51_v15 }
 0x129   :  { %2921 = vmatpush.msk.msra.mxu0 %vm3992_vm5, %v357_v41  ;;  %2923 = vmatpush.msk.msra.mxu1 %vm3992_vm5, %v358_v43 }
 0x12a   :  { %2926 = vmatmul.msk.f32.vlgmr.msra.gmra.mxu2 %vm3991_vm6, %v3361_v40  ;;  %v64_v22 = vand.u32 15, %v52_v18  ;;  %vm77_vm15 = vcmp.ne.s32.totalorder %v57_v19, 0 }
 0x12b   :  { %v411_v46 = vpop.permute.xlu1 %410  ;;  %v581_v60 = vpop.permute.xlu2 %580  ;;  %v3440_v28 = vsel %vm77_vm15, 1.0, %v3210_v0 }
 0x12c   :  { %v414_v48 = vsel %vm3996_vm9, %v409_v34, %v411_v46  ;;  %v467_v49 = vpop.permute.xlu0 %466  ;;  %vm78_vm1 = vcmp.ne.s32.totalorder %v64_v22, 0 }
 0x12d   :  { %v471_v50 = vsel %vm470_vm12, %v465_v42, %v467_v49  ;;  %2927 = vmatpush.msk.msra.mxu3 %vm3992_vm5, %v414_v48  ;;  %v3444_v36 = vsel %vm78_vm1, 1.0, %v3210_v0 }
 0x12e   :  { %2914 = vmatmul.msk.f32.vlgmr.msrb.gmra.mxu0 %vm3991_vm6, %v3380_v47  ;;  %2916 = vmatmul.msk.f32.vlgmr.msrb.gmra.mxu1 %vm3991_vm6, %v3380_v47 }
 0x12f   :  { %2928 = vmatmul.msk.f32.vlgmr.msra.gmra.mxu3 %vm3991_vm6, %v3361_v40  ;;  %2930 = vmatpush.msk.msrb.mxu0 %vm3992_vm5, %v471_v50 }
 0x133   :  { %v469_v52 = vpop.permute.xlu1 %468 }
 0x134   :  { %v472_v54 = vsel %vm470_vm12, %v467_v49, %v469_v52  ;;  %v525_v55 = vpop.permute.xlu0 %524 }
 0x135   :  { %v529_v56 = vsel %vm3994_vm13, %v523_v51, %v525_v55  ;;  %2932 = vmatpush.msk.msrb.mxu1 %vm3992_vm5, %v472_v54 }
 0x136   :  { %2922 = vmatmul.msk.f32.vlgmr.msra.gmra.mxu0 %vm3991_vm6, %v3396_v53  ;;  %2924 = vmatmul.msk.f32.vlgmr.msra.gmra.mxu1 %vm3991_vm6, %v3396_v53 }
 0x137   :  { %2935 = vmatpush.msk.msrb.mxu2 %vm3992_vm5, %v529_v56  ;;  %v654_v56 = vpop.permute.xlu2 %653 }
 0x138   :  { %2936 = vmatmul.msk.f32.vlgmr.msrb.gmra.mxu2 %vm3991_vm6, %v3404_v57 }
 0x13b   :  { %v527_v58 = vpop.permute.xlu1 %526 }
 0x13c   :  { %v530_v61 = vsel %vm3994_vm13, %v525_v55, %v527_v58  ;;  %v583_v62 = vpop.permute.xlu0 %582 }
 0x13d   :  { %v587_v63 = vsel %vm3995_vm14, %v581_v60, %v583_v62  ;;  %2937 = vmatpush.msk.msrb.mxu3 %vm3992_vm5, %v530_v61 }
 0x13e   :  { %2931 = vmatmul.msk.f32.vlgmr.msrb.gmra.mxu0 %vm3991_vm6, %v3416_v59  ;;  %2933 = vmatmul.msk.f32.vlgmr.msrb.gmra.mxu1 %vm3991_vm6, %v3416_v59 }
 0x13f   :  { %2938 = vmatmul.msk.f32.vlgmr.msrb.gmra.mxu3 %vm3991_vm6, %v3404_v57  ;;  %2940 = vmatpush.msk.msra.mxu0 %vm3992_vm5, %v587_v63 }
 0x143   :  { %v585_v1 = vpop.permute.xlu1 %584 }
 0x144   :  { %v588_v3 = vsel %vm3995_vm14, %v583_v62, %v585_v1 }
 0x145   :  { %2942 = vmatpush.msk.msra.mxu1 %vm3992_vm5, %v588_v3  ;;  %vm84_vm5 = vcmp.ne.s32.totalorder %v64_v22, 15 }
 0x146   :  { %2941 = vmatmul.msk.f32.vlgmr.msra.gmra.mxu0 %vm3991_vm6, %v3431_v2  ;;  %2943 = vmatmul.msk.f32.vlgmr.msra.gmra.mxu1 %vm3991_vm6, %v3431_v2  ;;  %vm83_vm6 = vcmp.ne.s32.totalorder %v57_v19, 15  ;;  %v3450_v46 = vsel %vm84_vm5, 1.0, %v3210_v0  ;;  %vm670_vm5 = vcmask 1047808   ;;  %v3502_v19 = vld [vmem:[%s3984_s3 + $0x18] sm:$0xff] }
 0x147   :  { %v3447_v41 = vsel %vm83_vm6, 1.0, %v3210_v0  ;;  %vm697_vm6 = vcmask 64512  }
 0x18a   :  { %v213_v4 = vpop.f32.mrf.mxu2  ;;  %v233_v7 = vpop.f32.mrf.mxu3 }
 0x19a   :  { %v327_v10 = vpop.f32.mrf.mxu2  ;;  %v347_v12 = vpop.f32.mrf.mxu3 }
 0x1a3   :  { %v155_v5 = vpop.f32.mrf.mxu0  ;;  %v175_v6 = vpop.f32.mrf.mxu1 }
 0x1a4   :  { %v328_v23 = vadd.f32 %v327_v10, %v155_v5  ;;  %v348_v27 = vadd.f32 %v347_v12, %v175_v6  ;;  %v1510_v10 = vld.sshfl [vmem:[#allocation1] sm:$0xff pattern:$0x75316420]  ;;  %v3495_v12 = vld [vmem:[%s3987_s6 + $0x18] sm:$0xff] }
 0x1ab   :  { %v271_v8 = vpop.f32.mrf.mxu0  ;;  %v291_v9 = vpop.f32.mrf.mxu1 }
 0x1ad   :  { %v439_v16 = vpop.f32.mrf.mxu2 }
 0x1ae   :  { %v440_v32 = vadd.f32 %v439_v16, %v271_v8  ;;  %v3481_v8 = vld [vmem:[%s3985_s4] sm:$0xff] }
 0x1b2   :  { %v459_v20 = vpop.f32.mrf.mxu3 }
 0x1b3   :  { %v383_v13 = vpop.f32.mrf.mxu0  ;;  %v403_v14 = vpop.f32.mrf.mxu1  ;;  %v460_v38 = vadd.f32 %v459_v20, %v291_v9  ;;  %v3487_v9 = vld [vmem:[%s3987_s6] sm:$0xff] }
 0x1b4   :  { %v404_v29 = vadd.f32 %v403_v14, %v233_v7  ;;  %v384_v34 = vadd.f32 %v383_v13, %v213_v4 }
 0x1bb   :  { %v497_v21 = vpop.f32.mrf.mxu0  ;;  %v517_v24 = vpop.f32.mrf.mxu1 }
 0x1bc   :  { %v636_v25 = vadd.f32 %v497_v21, %v328_v23  ;;  %v555_v30 = vpop.f32.mrf.mxu2  ;;  %v637_v31 = vadd.f32 %v517_v24, %v348_v27 }
 0x1bd   :  { %v638_v43 = vadd.f32 %v555_v30, %v384_v34  ;;  %v3512_v34 = vld [vmem:[%s3984_s3 + $0x28] sm:$0xff] }
 0x1be   :  { %v642_v35 = vmul.f32 %v3440_v28, %v636_v25  ;;  %v643_v49 = vmul.f32 %v3444_v36, %v637_v31 }
 0x1c0   :  { %v644_v51 = vadd.f32 %v642_v35, %v638_v43 }
 0x1c2   :  { %v575_v37 = vpop.f32.mrf.mxu3 }
 0x1c3   :  { %v639_v39 = vadd.f32 %v575_v37, %v404_v29  ;;  %v613_v42 = vpop.f32.mrf.mxu0  ;;  %v633_v48 = vpop.f32.mrf.mxu1 }
 0x1c4   :  { %v640_v45 = vadd.f32 %v613_v42, %v440_v32  ;;  %v641_v50 = vadd.f32 %v633_v48, %v460_v38 }
 0x1c5   :  { %v645_v54 = vadd.f32 %v643_v49, %v639_v39  ;;  %v3525_v49 = vld [vmem:[%s3984_s3 + $0x20] sm:$0xff] }
 0x1c6   :  { %v646_v52 = vmul.f32 %v3447_v41, %v640_v45  ;;  %v647_v55 = vmul.f32 %v3450_v46, %v641_v50 }
 0x1c8   :  { %v648_v58 = vadd.f32 %v646_v52, %v644_v51  ;;  %v649_v60 = vadd.f32 %v647_v55, %v645_v54  ;;  %v3532_v52 = vld [vmem:[%s3984_s3 + $0x8] sm:$0xff] }
 0x1ca   :  { %v656_v61 = vadd.f32 %v654_v56, %v648_v58  ;;  %v657_v62 = vadd.f32 %v654_v56, %v649_v60 }
 0x1cc   :  { %v658_v63 = vmax.f32 %v656_v61, 0.0  ;;  %v659_v1 = vmax.f32 %v657_v62, 0.0 }
 0x1ce   :  { %662 = vrot.lane.b32.xlu0 %v658_v63, %s3211_s7  ;;  %664 = vrot.lane.b32.xlu1 %v659_v1, %s3211_s7 }
 0x240   :  { %v663_v0 = vpop.permute.xlu0 %662  ;;  %v665_v3 = vpop.permute.xlu1 %664 }
 0x241   :  { %671 = vst.msk [vmem:[#allocation2] sm:$0xff] %vm670_vm5, %v663_v0  ;;  %v666_v4 = vsel %vm46_vm0, %v663_v0, %v665_v3 }
 0x242   :  { %673 = vst.msk [vmem:[#allocation2 + $0x10] sm:$0xff] %vm46_vm0, %v665_v3 }
 0x243   :  { %672 = vst [vmem:[#allocation2 + $0x8] sm:$0xff] %v666_v4 }
 0x248   :  { %v674_v6 = vld [vmem:[#allocation2] sm:$0xff] }
 0x249   :  { %v676_v5 = vld [vmem:[#allocation2 + $0x10] sm:$0xff]  ;;  %v3096_v7 = vpack.i.bf16 %v666_v4, %v674_v6  ;;  %v3547_v4 = vld [vmem:[%s3984_s3] sm:$0xff] }
 0x24a   :  { %747 = vrot.lane.b32.xlu1 %v676_v5, %s3213_s18  ;;  %802 = vrot.lane.b32.xlu2 %v676_v5, %s3214_s19 }
 0x24b   :  { %691 = vrot.lane.b32.xlu0 %v676_v5, %s3212_s0 }
 0x252   :  { %3097 = vrot.lane.b32.xlu1 %v3096_v7, %s3214_s19  ;;  %3092 = vrot.lane.b32.xlu2 %v3096_v7, %s3212_s0 }
 0x253   :  { %908 = vrot.lane.b32.xlu0 %v676_v5, %s3216_s21 }
 0x25a   :  { %1016 = vrot.lane.b32.xlu1 %v676_v5, %s3218_s23  ;;  %855 = vrot.lane.b32.xlu2 %v676_v5, %s3215_s20 }
 0x25b   :  { %3102 = vrot.lane.b32.xlu0 %v3096_v7, %s3213_s18 }
 0x262   :  { %3112 = vrot.lane.b32.xlu1 %v3096_v7, %s3215_s20  ;;  %3107 = vrot.lane.b32.xlu2 %v3096_v7, %s3216_s21 }
 0x263   :  { %3117 = vrot.lane.b32.xlu0 %v3096_v7, %s3218_s23 }
 0x26a   :  { %3127 = vrot.lane.b32.xlu1 %v3096_v7, %s3220_s25  ;;  %3122 = vrot.lane.b32.xlu2 %v3096_v7, %s3217_s22 }
 0x26b   :  { %961 = vrot.lane.b32.xlu0 %v676_v5, %s3217_s22 }
 0x272   :  { %1071 = vrot.lane.b32.xlu1 %v676_v5, %s3219_s24  ;;  %1126 = vrot.lane.b32.xlu2 %v676_v5, %s3220_s25 }
 0x273   :  { %3132 = vrot.lane.b32.xlu0 %v3096_v7, %s3219_s24  ;;  %v3554_v7 = vld [vmem:[%s3984_s3 + $0x30] sm:$0xff] }
 0x27a   :  { %1192 = vperm.xlu2 %3090, %v3481_v8   ;;  %1514 = vrot.lane.b32.xlu1 %v1511_v11, %s3211_s7  ;;  %v3564_v11 = vld [vmem:[%s3987_s6 + $0x8] sm:$0xff] }
 0x27b   :  { %1512 = vrot.lane.b32.xlu0 %v1510_v10, %s3211_s7 }
 0x282   :  { %1209 = vperm.xlu2 %3090, %v3487_v9  }
 0x283   :  { %1214 = vperm.xlu0 %3136, %v3564_v11  }
 0x28a   :  { %1224 = vperm.xlu2 %3090, %v3495_v12  }
 0x2a4   :  { %v803_v13 = vpop.permute.xlu2 %802 }
 0x2ac   :  { %v3093_v14 = vpop.permute.xlu2 %3092 }
 0x2ad   :  { %v3095_v15 = vunpack.i.h.bf16 %v3093_v14  ;;  %v3094_v16 = vunpack.i.l.bf16 %v3093_v14 }
 0x2af   :  { %v693_v18 = vsel %vm126_vm8, %v3094_v16, %v3095_v15 }
 0x2b0   :  { %716 = vmatpush.msra.mxu2 %v693_v18 }
 0x2b1   :  { %2947 = vmatmul.msk.f32.vlgmr.msra.gmra.mxu2 %vm697_vm6, %v3502_v19 }
 0x2b4   :  { %v856_v20 = vpop.permute.xlu2 %855 }
 0x2bc   :  { %v748_v21 = vpop.permute.xlu1 %747  ;;  %v3108_v24 = vpop.permute.xlu2 %3107 }
 0x2bd   :  { %v692_v22 = vpop.permute.xlu0 %691  ;;  %v3110_v25 = vunpack.i.h.bf16 %v3108_v24  ;;  %v3109_v27 = vunpack.i.l.bf16 %v3108_v24  ;;  %v3583_v24 = vld [vmem:[%s3984_s3 + $0x10] sm:$0xff] }
 0x2be   :  { %v694_v23 = vsel %vm126_vm8, %v3095_v15, %v692_v22 }
 0x2bf   :  { %736 = vmatpush.msra.mxu3 %v694_v23  ;;  %v910_v38 = vsel %vm356_vm11, %v3109_v27, %v3110_v25 }
 0x2c0   :  { %2948 = vmatmul.msk.f32.vlgmr.msra.gmra.mxu3 %vm697_vm6, %v3502_v19 }
 0x2c4   :  { %v3098_v29 = vpop.permute.xlu1 %3097  ;;  %v3123_v54 = vpop.permute.xlu2 %3122 }
 0x2c5   :  { %v909_v30 = vpop.permute.xlu0 %908  ;;  %v3100_v31 = vunpack.i.h.bf16 %v3098_v29  ;;  %v3099_v32 = vunpack.i.l.bf16 %v3098_v29  ;;  %v3125_v61 = vunpack.i.h.bf16 %v3123_v54  ;;  %v3124_v62 = vunpack.i.l.bf16 %v3123_v54 }
 0x2c6   :  { %v911_v39 = vsel %vm356_vm11, %v3110_v25, %v909_v30  ;;  %v3588_v25 = vld [vmem:[%s3984_s3 + $0x40] sm:$0xff] }
 0x2c7   :  { %v804_v35 = vsel %vm244_vm10, %v3099_v32, %v3100_v31  ;;  %v805_v37 = vsel %vm244_vm10, %v3100_v31, %v803_v13  ;;  %v963_v10 = vsel %vm3996_vm9, %v3124_v62, %v3125_v61  ;;  %v3569_v13 = vld [vmem:[%s3987_s6 + $0x10] sm:$0xff]  ;;  %v3601_v32 = vld [vmem:[%s3984_s3 + $0x38] sm:$0xff] }
 0x2c8   :  { %826 = vmatpush.msrb.mxu2 %v804_v35  ;;  %846 = vmatpush.msrb.mxu3 %v805_v37 }
 0x2c9   :  { %2954 = vmatmul.msk.f32.vlgmr.msrb.gmra.mxu3 %vm697_vm6, %v3512_v34  ;;  %2953 = vmatmul.msk.f32.vlgmr.msrb.gmra.mxu2 %vm697_vm6, %v3512_v34 }
 0x2ca   :  { %932 = vmatpush.msra.mxu2 %v910_v38  ;;  %952 = vmatpush.msra.mxu3 %v911_v39 }
 0x2cb   :  { %1219 = vperm.xlu1 %3137, %v3569_v13  }
 0x2cc   :  { %v1017_v42 = vpop.permute.xlu1 %1016 }
 0x2cd   :  { %v3103_v43 = vpop.permute.xlu0 %3102 }
 0x2ce   :  { %v3105_v45 = vunpack.i.h.bf16 %v3103_v43  ;;  %v3104_v48 = vunpack.i.l.bf16 %v3103_v43 }
 0x2d0   :  { %v749_v50 = vsel %vm186_vm4, %v3104_v48, %v3105_v45  ;;  %v750_v51 = vsel %vm186_vm4, %v3105_v45, %v748_v21 }
 0x2d1   :  { %771 = vmatpush.msrb.mxu0 %v749_v50  ;;  %791 = vmatpush.msrb.mxu1 %v750_v51 }
 0x2d2   :  { %2950 = vmatmul.msk.f32.vlgmr.msrb.gmra.mxu0 %vm697_vm6, %v3525_v49  ;;  %2951 = vmatmul.msk.f32.vlgmr.msrb.gmra.mxu1 %vm697_vm6, %v3525_v49 }
 0x2d3   :  { %2958 = vmatmul.msk.f32.vlgmr.msra.gmra.mxu3 %vm697_vm6, %v3532_v52  ;;  %2957 = vmatmul.msk.f32.vlgmr.msra.gmra.mxu2 %vm697_vm6, %v3532_v52 }
 0x2d4   :  { %v3113_v55 = vpop.permute.xlu1 %3112 }
 0x2d5   :  { %v3118_v56 = vpop.permute.xlu0 %3117  ;;  %v3115_v58 = vunpack.i.h.bf16 %v3113_v55  ;;  %v3114_v60 = vunpack.i.l.bf16 %v3113_v55 }
 0x2d6   :  { %v3120_v63 = vunpack.i.h.bf16 %v3118_v56  ;;  %v3119_v1 = vunpack.i.l.bf16 %v3118_v56 }
 0x2d7   :  { %v857_v0 = vsel %vm3993_vm7, %v3114_v60, %v3115_v58  ;;  %v858_v3 = vsel %vm3993_vm7, %v3115_v58, %v856_v20  ;;  %v1127_v20 = vpop.permute.xlu2 %1126 }
 0x2d8   :  { %879 = vmatpush.msra.mxu0 %v857_v0  ;;  %899 = vmatpush.msra.mxu1 %v858_v3  ;;  %v1018_v5 = vsel %vm470_vm12, %v3119_v1, %v3120_v63  ;;  %v1019_v6 = vsel %vm470_vm12, %v3120_v63, %v1017_v42 }
 0x2d9   :  { %1040 = vmatpush.msrb.mxu2 %v1018_v5  ;;  %1060 = vmatpush.msrb.mxu3 %v1019_v6 }
 0x2da   :  { %2955 = vmatmul.msk.f32.vlgmr.msra.gmra.mxu0 %vm697_vm6, %v3547_v4  ;;  %2956 = vmatmul.msk.f32.vlgmr.msra.gmra.mxu1 %vm697_vm6, %v3547_v4 }
 0x2db   :  { %985 = vmatpush.msrb.mxu0 %v963_v10  ;;  %2963 = vmatmul.msk.f32.vlgmr.msrb.gmra.mxu3 %vm697_vm6, %v3554_v7 }
 0x2dc   :  { %2962 = vmatmul.msk.f32.vlgmr.msrb.gmra.mxu2 %vm697_vm6, %v3554_v7  ;;  %v3128_v14 = vpop.permute.xlu1 %3127 }
 0x2dd   :  { %v962_v15 = vpop.permute.xlu0 %961  ;;  %v3130_v16 = vunpack.i.h.bf16 %v3128_v14  ;;  %v3129_v18 = vunpack.i.l.bf16 %v3128_v14 }
 0x2de   :  { %v964_v21 = vsel %vm3996_vm9, %v3125_v61, %v962_v15 }
 0x2df   :  { %1005 = vmatpush.msrb.mxu1 %v964_v21  ;;  %v1128_v22 = vsel %vm3995_vm14, %v3129_v18, %v3130_v16  ;;  %v1129_v23 = vsel %vm3995_vm14, %v3130_v16, %v1127_v20  ;;  %v1193_v60 = vpop.permute.xlu2 %1192 }
 0x2e0   :  { %1150 = vmatpush.msra.mxu2 %v1128_v22  ;;  %1170 = vmatpush.msra.mxu3 %v1129_v23 }
 0x2e2   :  { %2959 = vmatmul.msk.f32.vlgmr.msrb.gmra.mxu0 %vm697_vm6, %v3583_v24  ;;  %2960 = vmatmul.msk.f32.vlgmr.msrb.gmra.mxu1 %vm697_vm6, %v3583_v24 }
 0x2e3   :  { %2969 = vmatmul.msk.f32.vlgmr.msra.gmra.mxu3 %vm697_vm6, %v3588_v25 }
 0x2e4   :  { %2968 = vmatmul.msk.f32.vlgmr.msra.gmra.mxu2 %vm697_vm6, %v3588_v25  ;;  %v1072_v31 = vpop.permute.xlu1 %1071 }
 0x2e5   :  { %v3133_v27 = vpop.permute.xlu0 %3132 }
 0x2e6   :  { %v3135_v29 = vunpack.i.h.bf16 %v3133_v27  ;;  %v3134_v30 = vunpack.i.l.bf16 %v3133_v27 }
 0x2e7   :  { %v3640_v0 = vpop.permute.xlu2 %1209 }
 0x2e8   :  { %v1074_v35 = vsel %vm3994_vm13, %v3135_v29, %v1072_v31  ;;  %v1073_v37 = vsel %vm3994_vm13, %v3134_v30, %v3135_v29 }
 0x2e9   :  { %1095 = vmatpush.msra.mxu0 %v1073_v37  ;;  %1115 = vmatpush.msra.mxu1 %v1074_v35 }
 0x2ea   :  { %2965 = vmatmul.msk.f32.vlgmr.msra.gmra.mxu0 %vm697_vm6, %v3601_v32  ;;  %2966 = vmatmul.msk.f32.vlgmr.msra.gmra.mxu1 %vm697_vm6, %v3601_v32 }
 0x2ec   :  { %v1515_v39 = vpop.permute.xlu1 %1514 }
 0x2ed   :  { %v1513_v38 = vpop.permute.xlu0 %1512  ;;  %1522 = vst.msk [vmem:[#allocation2 + $0x10] sm:$0xf] %vm105_vm3, %v1515_v39 }
 0x2ee   :  { %1520 = vst.msk [vmem:[#allocation2] sm:$0xf] %vm102_vm2, %v1513_v38  ;;  %v1516_v42 = vsel %vm46_vm0, %v1513_v38, %v1515_v39  ;;  %vm3997_vm2 = vcmask 1043456  }
 0x2ef   :  { %1521 = vst [vmem:[#allocation2 + $0x8] sm:$0xf] %v1516_v42  ;;  %v3642_v20 = vpop.permute.xlu2 %1224  ;;  %vm3998_vm3 = vmmov %vm3997_vm2 }
 0x2f0   :  { %vm3999_vm15 = vmmov %vm3997_vm2 }
 0x2f1   :  { %vm4000_vm1 = vmmov %vm3997_vm2 }
 0x2f4   :  { %v1525_v48 = vld [vmem:[#allocation2 + $0x10] sm:$0xf] }
 0x2f5   :  { %v1523_v43 = vld [vmem:[#allocation2] sm:$0xf]  ;;  %1537 = vrot.lane.b32.xlu0 %v1525_v48, %s3212_s0 }
 0x2f6   :  { %1533 = vrot.lane.b32.xlu1 %v1523_v43, %s3212_s0  ;;  %v1524_v45 = vld [vmem:[#allocation2 + $0x8] sm:$0xf] }
 0x2f7   :  { %1535 = vrot.lane.b32.xlu2 %v1524_v45, %s3212_s0 }
 0x2fd   :  { %1593 = vrot.lane.b32.xlu0 %v1525_v48, %s3213_s18 }
 0x2fe   :  { %1589 = vrot.lane.b32.xlu1 %v1523_v43, %s3213_s18 }
 0x2ff   :  { %1591 = vrot.lane.b32.xlu2 %v1524_v45, %s3213_s18 }
 0x305   :  { %1649 = vrot.lane.b32.xlu0 %v1525_v48, %s3214_s19 }
 0x306   :  { %1645 = vrot.lane.b32.xlu1 %v1523_v43, %s3214_s19 }
 0x307   :  { %1647 = vrot.lane.b32.xlu2 %v1524_v45, %s3214_s19 }
 0x30d   :  { %1704 = vrot.lane.b32.xlu0 %v1525_v48, %s3215_s20 }
 0x30e   :  { %1700 = vrot.lane.b32.xlu1 %v1523_v43, %s3215_s20 }
 0x30f   :  { %1702 = vrot.lane.b32.xlu2 %v1524_v45, %s3215_s20 }
 0x315   :  { %1759 = vrot.lane.b32.xlu0 %v1525_v48, %s3216_s21 }
 0x316   :  { %1755 = vrot.lane.b32.xlu1 %v1523_v43, %s3216_s21 }
 0x317   :  { %1757 = vrot.lane.b32.xlu2 %v1524_v45, %s3216_s21 }
 0x31d   :  { %1814 = vrot.lane.b32.xlu0 %v1525_v48, %s3217_s22 }
 0x31e   :  { %1810 = vrot.lane.b32.xlu1 %v1523_v43, %s3217_s22 }
 0x31f   :  { %1812 = vrot.lane.b32.xlu2 %v1524_v45, %s3217_s22 }
 0x325   :  { %1870 = vrot.lane.b32.xlu0 %v1525_v48, %s3218_s23 }
 0x326   :  { %1866 = vrot.lane.b32.xlu1 %v1523_v43, %s3218_s23 }
 0x327   :  { %1868 = vrot.lane.b32.xlu2 %v1524_v45, %s3218_s23 }
 0x32d   :  { %1926 = vrot.lane.b32.xlu0 %v1525_v48, %s3219_s24 }
 0x32e   :  { %1922 = vrot.lane.b32.xlu1 %v1523_v43, %s3219_s24 }
 0x32f   :  { %1924 = vrot.lane.b32.xlu2 %v1524_v45, %s3219_s24 }
 0x334   :  { %v718_v51 = vpop.f32.mrf.mxu2 }
 0x335   :  { %1982 = vrot.lane.b32.xlu0 %v1525_v48, %s3220_s25 }
 0x336   :  { %1978 = vrot.lane.b32.xlu1 %v1523_v43, %s3220_s25 }
 0x337   :  { %1980 = vrot.lane.b32.xlu2 %v1524_v45, %s3220_s25 }
 0x33e   :  { %2050 = vperm.xlu1 %3137, %v3372_v44  }
 0x343   :  { %v738_v50 = vpop.f32.mrf.mxu3 }
 0x34c   :  { %v848_v54 = vpop.f32.mrf.mxu3  ;;  %v828_v55 = vpop.f32.mrf.mxu2 }
 0x34f   :  { %v773_v56 = vpop.f32.mrf.mxu0  ;;  %v793_v58 = vpop.f32.mrf.mxu1 }
 0x356   :  { %v954_v61 = vpop.f32.mrf.mxu3  ;;  %v934_v62 = vpop.f32.mrf.mxu2 }
 0x357   :  { %v881_v63 = vpop.f32.mrf.mxu0  ;;  %v901_v1 = vpop.f32.mrf.mxu1  ;;  %v935_v18 = vadd.f32 %v934_v62, %v773_v56  ;;  %v955_v23 = vadd.f32 %v954_v61, %v793_v58 }
 0x358   :  { %v882_v3 = vadd.f32 %v881_v63, %v718_v51  ;;  %v902_v15 = vadd.f32 %v901_v1, %v738_v50  ;;  %v3650_v56 = vpop.permute.xlu1 %1219  ;;  %v1536_v61 = vpop.permute.xlu2 %1535 }
 0x35e   :  { %v1062_v5 = vpop.f32.mrf.mxu3 }
 0x35f   :  { %v987_v6 = vpop.f32.mrf.mxu0  ;;  %v1007_v10 = vpop.f32.mrf.mxu1  ;;  %v1176_v44 = vadd.f32 %v1062_v5, %v902_v15 }
 0x360   :  { %v1042_v14 = vpop.f32.mrf.mxu2  ;;  %v988_v21 = vadd.f32 %v987_v6, %v828_v55  ;;  %v1008_v22 = vadd.f32 %v1007_v10, %v848_v54  ;;  %v3648_v55 = vpop.permute.xlu0 %1214 }
 0x361   :  { %v1175_v16 = vadd.f32 %v1042_v14, %v882_v3  ;;  %v1182_v37 = vmul.f32 %v3444_v36, %v1176_v44  ;;  %v3655_v3 = vld [vmem:[%s3986_s5] sm:$0xff]  ;;  %v1592_v15 = vpop.permute.xlu2 %1591 }
 0x363   :  { %v1181_v27 = vmul.f32 %v3440_v28, %v1175_v16  ;;  %v3668_v16 = vld [vmem:[%s3986_s5 + $0x8] sm:$0xff] }
 0x366   :  { %v1172_v29 = vpop.f32.mrf.mxu3 }
 0x367   :  { %v1180_v30 = vadd.f32 %v1172_v29, %v1008_v22  ;;  %v1097_v31 = vpop.f32.mrf.mxu0  ;;  %v1117_v35 = vpop.f32.mrf.mxu1 }
 0x368   :  { %v1177_v38 = vadd.f32 %v1097_v31, %v935_v18  ;;  %v1178_v39 = vadd.f32 %v1117_v35, %v955_v23  ;;  %v1152_v42 = vpop.f32.mrf.mxu2  ;;  %v1538_v6 = vpop.permute.xlu0 %1537 }
 0x369   :  { %v1179_v43 = vadd.f32 %v1152_v42, %v988_v21  ;;  %v1186_v45 = vmul.f32 %v3450_v46, %v1180_v30  ;;  %v1534_v10 = vpop.permute.xlu1 %1533  ;;  %v1648_v23 = vpop.permute.xlu2 %1647 }
 0x36a   :  { %v1183_v48 = vadd.f32 %v1181_v27, %v1177_v38  ;;  %v1184_v50 = vadd.f32 %v1182_v37, %v1178_v39  ;;  %v1539_v14 = vsel %vm126_vm8, %v1534_v10, %v1536_v61  ;;  %v3683_v27 = vld [vmem:[%s3986_s5 + $0x10] sm:$0xff]  ;;  %v3696_v38 = vld [vmem:[%s3986_s5 + $0x18] sm:$0xff] }
 0x36b   :  { %v1185_v51 = vmul.f32 %v3447_v41, %v1179_v43 }
 0x36c   :  { %v1188_v54 = vadd.f32 %v1186_v45, %v1184_v50 }
 0x36d   :  { %v1187_v58 = vadd.f32 %v1185_v51, %v1183_v48 }
 0x36e   :  { %v1196_v62 = vadd.f32 %v1193_v60, %v1188_v54 }
 0x36f   :  { %v1195_v63 = vadd.f32 %v1193_v60, %v1187_v58  ;;  %v1540_v60 = vsel %vm126_vm8, %v1536_v61, %v1538_v6 }
 0x370   :  { %v1198_v1 = vmax.f32 %v1196_v62, 0.0  ;;  %v1594_v18 = vpop.permute.xlu0 %1593 }
 0x371   :  { %v1197_v5 = vmax.f32 %v1195_v63, 0.0  ;;  %v1590_v44 = vpop.permute.xlu1 %1589  ;;  %v3678_v22 = vsel %vm186_vm4, %v1592_v15, %v1594_v18  ;;  %v1703_v37 = vpop.permute.xlu2 %1702 }
 0x372   :  { %1283 = vmatpush.msrb.mxu1 %v1198_v1  ;;  %v3675_v21 = vsel %vm186_vm4, %v1590_v44, %v1592_v15 }
 0x373   :  { %1254 = vmatpush.msrb.mxu0 %v1197_v5  ;;  %2974 = vmatmul.msk.f32.vlgmr.msrb.gmra.mxu1 %vm697_vm6, %v3655_v3 }
 0x374   :  { %2970 = vmatmul.msk.f32.vlgmr.msrb.gmra.mxu0 %vm697_vm6, %v3655_v3  ;;  %2992 = vmatpush.msk.msra.mxu1 %vm3998_vm3, %v1540_v60 }
 0x375   :  { %2990 = vmatpush.msk.msra.mxu0 %vm3997_vm2, %v1539_v14  ;;  %vm4001_vm2 = vcmask 31744  }
 0x376   :  { %vm4002_vm3 = vmmov %vm4001_vm2 }
 0x378   :  { %v1650_v29 = vpop.permute.xlu0 %1649 }
 0x379   :  { %v1646_v30 = vpop.permute.xlu1 %1645  ;;  %v1652_v35 = vsel %vm244_vm10, %v1648_v23, %v1650_v29  ;;  %v1758_v48 = vpop.permute.xlu2 %1757 }
 0x37a   :  { %v1651_v31 = vsel %vm244_vm10, %v1646_v30, %v1648_v23  ;;  %3002 = vmatpush.msk.msrb.mxu1 %vm4000_vm1, %v1652_v35 }
 0x37b   :  { %2975 = vmatmul.msk.f32.gmra.mxu1 %vm697_vm6, %v3668_v16  ;;  %3000 = vmatpush.msk.msrb.mxu0 %vm3999_vm15, %v1651_v31  ;;  %vm4003_vm15 = vmmov %vm4000_vm1 }
 0x37c   :  { %2971 = vmatmul.msk.f32.gmra.mxu0 %vm697_vm6, %v3668_v16 }
 0x380   :  { %v1705_v39 = vpop.permute.xlu0 %1704 }
 0x381   :  { %v1701_v42 = vpop.permute.xlu1 %1700  ;;  %v3706_v45 = vsel %vm3993_vm7, %v1703_v37, %v1705_v39  ;;  %v1813_v61 = vpop.permute.xlu2 %1812 }
 0x382   :  { %v3703_v43 = vsel %vm3993_vm7, %v1701_v42, %v1703_v37  ;;  %vm4004_vm7 = vmmov %vm4001_vm2 }
 0x383   :  { %2976 = vmatmul.msk.f32.gmra.mxu1 %vm697_vm6, %v3683_v27 }
 0x384   :  { %2972 = vmatmul.msk.f32.gmra.mxu0 %vm697_vm6, %v3683_v27 }
 0x388   :  { %v1760_v50 = vpop.permute.xlu0 %1759 }
 0x389   :  { %v1756_v51 = vpop.permute.xlu1 %1755  ;;  %v1762_v58 = vsel %vm356_vm11, %v1758_v48, %v1760_v50  ;;  %v1869_v5 = vpop.permute.xlu2 %1868  ;;  %v1305_v50 = vld [vmem:[#allocation3] sm:$0x7] }
 0x38a   :  { %v1761_v54 = vsel %vm356_vm11, %v1756_v51, %v1758_v48 }
 0x38b   :  { %2977 = vmatmul.msk.f32.gmra.mxu1 %vm697_vm6, %v3696_v38 }
 0x38c   :  { %2973 = vmatmul.msk.f32.gmra.mxu0 %vm697_vm6, %v3696_v38 }
 0x390   :  { %v1815_v62 = vpop.permute.xlu0 %1814 }
 0x391   :  { %v1811_v63 = vpop.permute.xlu1 %1810 }
 0x392   :  { %v3721_v1 = vsel %vm3996_vm9, %v1811_v63, %v1813_v61 }
 0x393   :  { %2993 = vmatmul.msk.f32.vlgmr.msra.gmra.mxu1 %vm4001_vm2, %v3345_v33 }
 0x394   :  { %2991 = vmatmul.msk.f32.vlgmr.msra.gmra.mxu0 %vm4002_vm3, %v3345_v33  ;;  %3010 = vmatpush.msk.msra.mxu1 %vm4000_vm1, %v1762_v58  ;;  %v3724_v33 = vsel %vm3996_vm9, %v1813_v61, %v1815_v62  ;;  %vm4005_vm3 = vmmov %vm4001_vm2 }
 0x395   :  { %3008 = vmatpush.msk.msra.mxu0 %vm4003_vm15, %v1761_v54  ;;  %vm4006_vm15 = vmmov %vm4001_vm2 }
 0x398   :  { %v1871_v6 = vpop.permute.xlu0 %1870 }
 0x399   :  { %v1867_v10 = vpop.permute.xlu1 %1866  ;;  %v1873_v60 = vsel %vm470_vm12, %v1869_v5, %v1871_v6 }
 0x39a   :  { %v1872_v14 = vsel %vm470_vm12, %v1867_v10, %v1869_v5 }
 0x39b   :  { %3003 = vmatmul.msk.f32.vlgmr.msrb.gmra.mxu1 %vm4004_vm7, %v3380_v47  ;;  %vm4007_vm7 = vmmov %vm4000_vm1 }
 0x39c   :  { %3001 = vmatmul.msk.f32.vlgmr.msrb.gmra.mxu0 %vm4001_vm2, %v3380_v47  ;;  %3019 = vmatpush.msk.msrb.mxu1 %vm4000_vm1, %v1873_v60  ;;  %v1925_v47 = vpop.permute.xlu2 %1924 }
 0x39d   :  { %3017 = vmatpush.msk.msrb.mxu0 %vm4007_vm7, %v1872_v14  ;;  %vm4010_vm7 = vmmov %vm4000_vm1 }
 0x3a0   :  { %v1927_v15 = vpop.permute.xlu0 %1926 }
 0x3a1   :  { %v1923_v18 = vpop.permute.xlu1 %1922 }
 0x3a2   :  { %v3739_v44 = vsel %vm3994_vm13, %v1923_v18, %v1925_v47 }
 0x3a3   :  { %3011 = vmatmul.msk.f32.vlgmr.msra.gmra.mxu1 %vm4005_vm3, %v3396_v53  ;;  %vm4008_vm3 = vmmov %vm4001_vm2 }
 0x3a4   :  { %3009 = vmatmul.msk.f32.vlgmr.msra.gmra.mxu0 %vm4006_vm15, %v3396_v53  ;;  %v1929_v53 = vsel %vm3994_vm13, %v1925_v47, %v1927_v15  ;;  %v1981_v23 = vpop.permute.xlu2 %1980  ;;  %vm4009_vm15 = vmmov %vm4000_vm1 }
 0x3a5   :  { %vm4011_vm1 = vmmov %vm4001_vm2 }
 0x3a8   :  { %v1983_v29 = vpop.permute.xlu0 %1982 }
 0x3a9   :  { %v1979_v30 = vpop.permute.xlu1 %1978  ;;  %v1985_v35 = vsel %vm3995_vm14, %v1981_v23, %v1983_v29 }
 0x3aa   :  { %v1984_v31 = vsel %vm3995_vm14, %v1979_v30, %v1981_v23  ;;  %3029 = vmatpush.msk.msra.mxu1 %vm4010_vm7, %v1985_v35 }
 0x3ab   :  { %3020 = vmatmul.msk.f32.vlgmr.msrb.gmra.mxu1 %vm4001_vm2, %v3416_v59  ;;  %3027 = vmatpush.msk.msra.mxu0 %vm4009_vm15, %v1984_v31  ;;  %vm4012_vm2 = vmmov %vm4011_vm1 }
 0x3ac   :  { %3018 = vmatmul.msk.f32.vlgmr.msrb.gmra.mxu0 %vm4008_vm3, %v3416_v59  ;;  %vm4013_vm3 = vmmov %vm4010_vm7 }
 0x3ad   :  { %vm4014_vm15 = vmmov %vm4013_vm3 }
 0x3ae   :  { %vm4015_vm7 = vmmov %vm4013_vm3 }
 0x3af   :  { %vm4017_vm13 = vmmov %vm4012_vm2 }
 0x3b3   :  { %3030 = vmatmul.msk.f32.vlgmr.msra.gmra.mxu1 %vm4011_vm1, %v3431_v2  ;;  %vm4016_vm1 = vmmov %vm4013_vm3 }
 0x3b4   :  { %3028 = vmatmul.msk.f32.vlgmr.msra.gmra.mxu0 %vm4012_vm2, %v3431_v2  ;;  %vm4018_vm14 = vmmov %vm4016_vm1 }
 0x3b5   :  { %vm4022_vm9 = vmmov %vm4016_vm1 }
 0x3f0   :  { %v1285_v59 = vpop.f32.mrf.mxu1 }
 0x3f1   :  { %v1256_v37 = vpop.f32.mrf.mxu0  ;;  %v1286_v39 = vadd.f32 %v1285_v59, %v3640_v0 }
 0x3f2   :  { %v1257_v42 = vadd.f32 %v1256_v37, %v3640_v0 }
 0x3f3   :  { %v1298_v48 = vmax.f32 %v1286_v39, 0.0 }
 0x3f4   :  { %v1297_v51 = vmax.f32 %v1257_v42, 0.0 }
 0x3f5   :  { %1350 = vmatpush.msrb.mxu3 %v1298_v48 }
 0x3f6   :  { %1330 = vmatpush.msrb.mxu2 %v1297_v51  ;;  %2979 = vmatmul.msk.f32.vlgmr.msrb.gmra.mxu3 %vm697_vm6, %v1305_v50 }
 0x3f7   :  { %2978 = vmatmul.msk.f32.vlgmr.msrb.gmra.mxu2 %vm697_vm6, %v1305_v50 }
 0x3f8   :  { %v1288_v54 = vpop.f32.mrf.mxu1 }
 0x3f9   :  { %v1259_v58 = vpop.f32.mrf.mxu0  ;;  %v1289_v61 = vadd.f32 %v1288_v54, %v3648_v55 }
 0x3fa   :  { %v1260_v2 = vadd.f32 %v1259_v58, %v3648_v55 }
 0x3fb   :  { %v1300_v62 = vmax.f32 %v1289_v61, 0.0 }
 0x3fc   :  { %v1299_v63 = vmax.f32 %v1260_v2, 0.0 }
 0x3fd   :  { %1390 = vmatpush.msra.mxu3 %v1300_v62 }
 0x3fe   :  { %1370 = vmatpush.msra.mxu2 %v1299_v63  ;;  %2981 = vmatmul.msk.f32.vlgmr.msra.gmra.mxu3 %vm697_vm6, %v1305_v50 }
 0x3ff   :  { %2980 = vmatmul.msk.f32.vlgmr.msra.gmra.mxu2 %vm697_vm6, %v1305_v50 }
 0x400   :  { %v1291_v0 = vpop.f32.mrf.mxu1 }
 0x401   :  { %v1262_v5 = vpop.f32.mrf.mxu0  ;;  %v1292_v6 = vadd.f32 %v1291_v0, %v3650_v56 }
 0x402   :  { %v1263_v10 = vadd.f32 %v1262_v5, %v3650_v56 }
 0x403   :  { %v1302_v14 = vmax.f32 %v1292_v6, 0.0 }
 0x404   :  { %v1301_v60 = vmax.f32 %v1263_v10, 0.0 }
 0x405   :  { %1430 = vmatpush.msrb.mxu3 %v1302_v14 }
 0x406   :  { %1410 = vmatpush.msrb.mxu2 %v1301_v60  ;;  %2983 = vmatmul.msk.f32.vlgmr.msrb.gmra.mxu3 %vm697_vm6, %v1305_v50 }
 0x407   :  { %2982 = vmatmul.msk.f32.vlgmr.msrb.gmra.mxu2 %vm697_vm6, %v1305_v50 }
 0x408   :  { %v1294_v55 = vpop.f32.mrf.mxu1 }
 0x409   :  { %v1265_v47 = vpop.f32.mrf.mxu0  ;;  %v1295_v15 = vadd.f32 %v1294_v55, %v3642_v20 }
 0x40a   :  { %v1266_v18 = vadd.f32 %v1265_v47, %v3642_v20 }
 0x40b   :  { %v1304_v23 = vmax.f32 %v1295_v15, 0.0 }
 0x40c   :  { %v1303_v29 = vmax.f32 %v1266_v18, 0.0 }
 0x40d   :  { %1470 = vmatpush.msra.mxu3 %v1304_v23 }
 0x40e   :  { %1450 = vmatpush.msra.mxu2 %v1303_v29  ;;  %2985 = vmatmul.msk.f32.vlgmr.msra.gmra.mxu3 %vm697_vm6, %v1305_v50 }
 0x40f   :  { %2984 = vmatmul.msk.f32.vlgmr.msra.gmra.mxu2 %vm697_vm6, %v1305_v50  ;;  %2997 = vmatpush.msk.msrb.mxu3 %vm4013_vm3, %v3678_v22  ;;  %vm4019_vm3 = vmmov %vm4016_vm1 }
 0x410   :  { %2995 = vmatpush.msk.msrb.mxu2 %vm4014_vm15, %v3675_v21  ;;  %vm4020_vm15 = vmmov %vm4012_vm2  ;;  %v1585_v22 = vpop.f32.mrf.mxu1 }
 0x411   :  { %3006 = vmatpush.msk.msra.mxu3 %vm4015_vm7, %v3706_v45  ;;  %vm4021_vm7 = vmmov %vm4012_vm2  ;;  %v1565_v21 = vpop.f32.mrf.mxu0 }
 0x412   :  { %3004 = vmatpush.msk.msra.mxu2 %vm4016_vm1, %v3703_v43 }
 0x416   :  { %2998 = vmatmul.msk.f32.vlgmr.msrb.gmra.mxu3 %vm4012_vm2, %v3319_v17 }
 0x417   :  { %2996 = vmatmul.msk.f32.vlgmr.msrb.gmra.mxu2 %vm4017_vm13, %v3319_v17  ;;  %3014 = vmatpush.msk.msrb.mxu3 %vm4018_vm14, %v3724_v33  ;;  %vm4023_vm13 = vmmov %vm4012_vm2 }
 0x418   :  { %3012 = vmatpush.msk.msrb.mxu2 %vm4019_vm3, %v3721_v1  ;;  %vm4024_vm14 = vmmov %vm4012_vm2  ;;  %v1697_v33 = vpop.f32.mrf.mxu1 }
 0x419   :  { %vm4025_vm3 = vmmov %vm4012_vm2 }
 0x41e   :  { %3007 = vmatmul.msk.f32.vlgmr.msra.gmra.mxu3 %vm4020_vm15, %v3332_v26  ;;  %vm1493_vm15 = vcmask 1042432  }
 0x41f   :  { %3005 = vmatmul.msk.f32.vlgmr.msra.gmra.mxu2 %vm4021_vm7, %v3332_v26  ;;  %3024 = vmatpush.msk.msra.mxu3 %vm4022_vm9, %v1929_v53  ;;  %vm1496_vm7 = vcmask 1045504  }
 0x420   :  { %3022 = vmatpush.msk.msra.mxu2 %vm4016_vm1, %v3739_v44  ;;  %v1807_v31 = vpop.f32.mrf.mxu1  ;;  %vm1499_vm1 = vcmask 1040384  }
 0x426   :  { %3015 = vmatmul.msk.f32.vlgmr.msrb.gmra.mxu3 %vm4012_vm2, %v3361_v40 }
 0x427   :  { %3013 = vmatmul.msk.f32.vlgmr.msrb.gmra.mxu2 %vm4023_vm13, %v3361_v40  ;;  %v1677_v40 = vpop.f32.mrf.mxu0 }
 0x428   :  { %v1918_v39 = vpop.f32.mrf.mxu1 }
 0x42e   :  { %3025 = vmatmul.msk.f32.vlgmr.msra.gmra.mxu3 %vm4024_vm14, %v3404_v57 }
 0x42f   :  { %3023 = vmatmul.msk.f32.vlgmr.msra.gmra.mxu2 %vm4025_vm3, %v3404_v57  ;;  %v1787_v57 = vpop.f32.mrf.mxu0 }
 0x430   :  { %v2030_v62 = vpop.f32.mrf.mxu1 }
 0x437   :  { %v1898_v37 = vpop.f32.mrf.mxu0 }
 0x43f   :  { %v2010_v61 = vpop.f32.mrf.mxu0 }
 0x479   :  { %v3797_v17 = vpop.f32.mrf.mxu3 }
 0x47a   :  { %v3799_v26 = vpop.f32.mrf.mxu2 }
 0x481   :  { %v3801_v20 = vpop.f32.mrf.mxu3 }
 0x482   :  { %v3803_v56 = vpop.f32.mrf.mxu2 }
 0x489   :  { %v3805_v43 = vpop.f32.mrf.mxu3 }
 0x48a   :  { %v3807_v45 = vpop.f32.mrf.mxu2 }
 0x491   :  { %v3809_v1 = vpop.f32.mrf.mxu3 }
 0x492   :  { %v3811_v44 = vpop.f32.mrf.mxu2 }
 0x499   :  { %v1641_v53 = vpop.f32.mrf.mxu3 }
 0x49a   :  { %v1621_v30 = vpop.f32.mrf.mxu2  ;;  %v1808_v6 = vadd.f32 %v1807_v31, %v1641_v53 }
 0x49b   :  { %v1788_v0 = vadd.f32 %v1787_v57, %v1621_v30 }
 0x4a1   :  { %v1752_v35 = vpop.f32.mrf.mxu3 }
 0x4a2   :  { %v1732_v59 = vpop.f32.mrf.mxu2  ;;  %v1753_v50 = vadd.f32 %v1752_v35, %v1585_v22 }
 0x4a3   :  { %v1733_v42 = vadd.f32 %v1732_v59, %v1565_v21 }
 0x4a4   :  { %v2034_v63 = vadd.f32 %v1918_v39, %v1753_v50 }
 0x4a5   :  { %v2033_v2 = vadd.f32 %v1898_v37, %v1733_v42 }
 0x4a6   :  { %v2040_v55 = vmul.f32 %v3444_v36, %v2034_v63 }
 0x4a7   :  { %v2039_v14 = vmul.f32 %v3440_v28, %v2033_v2 }
 0x4a9   :  { %v1862_v48 = vpop.f32.mrf.mxu3 }
 0x4aa   :  { %v1842_v51 = vpop.f32.mrf.mxu2  ;;  %v1863_v58 = vadd.f32 %v1862_v48, %v1697_v33  ;;  %v2051_v33 = vpop.permute.xlu1 %2050 }
 0x4ab   :  { %v1843_v54 = vadd.f32 %v1842_v51, %v1677_v40  ;;  %v1306_v51 = vld [vmem:[%s3989_s8] sm:$0x7] }
 0x4ac   :  { %v2038_v10 = vadd.f32 %v2030_v62, %v1863_v58 }
 0x4ad   :  { %v2037_v5 = vadd.f32 %v2010_v61, %v1843_v54  ;;  %v2693_v54 = vld [vmem:[%s3989_s8] sm:$0x7] }
 0x4ae   :  { %v2044_v29 = vmul.f32 %v3450_v46, %v2038_v10 }
 0x4af   :  { %v2043_v23 = vmul.f32 %v3447_v41, %v2037_v5 }
 0x4b1   :  { %v1974_v60 = vpop.f32.mrf.mxu3 }
 0x4b2   :  { %v1954_v47 = vpop.f32.mrf.mxu2  ;;  %v2036_v15 = vadd.f32 %v1974_v60, %v1808_v6 }
 0x4b3   :  { %v2035_v18 = vadd.f32 %v1954_v47, %v1788_v0 }
 0x4b4   :  { %v2042_v21 = vadd.f32 %v2040_v55, %v2036_v15 }
 0x4b5   :  { %v2041_v22 = vadd.f32 %v2039_v14, %v2035_v18 }
 0x4b6   :  { %v2046_v40 = vadd.f32 %v2044_v29, %v2042_v21 }
 0x4b7   :  { %v2045_v57 = vadd.f32 %v2043_v23, %v2041_v22 }
 0x4b8   :  { %v2054_v30 = vadd.f32 %v2051_v33, %v2046_v40 }
 0x4b9   :  { %v2053_v53 = vadd.f32 %v2051_v33, %v2045_v57 }
 0x4ba   :  { %v2056_v31 = vmax.f32 %v2054_v30, 0.0 }
 0x4bb   :  { %v2055_v35 = vmax.f32 %v2053_v53, 0.0 }
 0x4bc   :  { %2061 = vrot.lane.b32.xlu0 %v2056_v31, %s3211_s7 }
 0x4bd   :  { %2059 = vrot.lane.b32.xlu2 %v2055_v35, %s3211_s7 }
 0x517   :  { %v2060_v59 = vpop.permute.xlu2 %2059 }
 0x518   :  { %2067 = vst.msk [vmem:[#allocation2] sm:$0xff] %vm670_vm5, %v2060_v59 }
 0x51f   :  { %v2070_v48 = vld [vmem:[#allocation2] sm:$0xff] }
 0x52e   :  { %v2062_v37 = vpop.permute.xlu0 %2061 }
 0x52f   :  { %v2063_v39 = vsel %vm46_vm0, %v2060_v59, %v2062_v37  ;;  %2069 = vst.msk [vmem:[#allocation2 + $0x10] sm:$0xff] %vm46_vm0, %v2062_v37  ;;  %vm4026_vm0 = vcmask 924672  }
 0x530   :  { %2068 = vst [vmem:[#allocation2 + $0x8] sm:$0xff] %v2063_v39  ;;  %v3143_v50 = vpack.i.bf16 %v2063_v39, %v2070_v48 }
 0x536   :  { %v2072_v42 = vld [vmem:[#allocation2 + $0x10] sm:$0xff] }
 0x537   :  { %2138 = vrot.lane.b32.xlu0 %v2072_v42, %s3213_s18  ;;  %2192 = vrot.lane.b32.xlu1 %v2072_v42, %s3214_s19 }
 0x538   :  { %2084 = vrot.lane.b32.xlu2 %v2072_v42, %s3212_s0 }
 0x53f   :  { %3144 = vrot.lane.b32.xlu0 %v3143_v50, %s3214_s19  ;;  %3139 = vrot.lane.b32.xlu1 %v3143_v50, %s3212_s0 }
 0x540   :  { %2298 = vrot.lane.b32.xlu2 %v2072_v42, %s3216_s21 }
 0x547   :  { %2405 = vrot.lane.b32.xlu0 %v2072_v42, %s3218_s23  ;;  %2245 = vrot.lane.b32.xlu1 %v2072_v42, %s3215_s20 }
 0x548   :  { %3149 = vrot.lane.b32.xlu2 %v3143_v50, %s3213_s18 }
 0x54f   :  { %3159 = vrot.lane.b32.xlu0 %v3143_v50, %s3215_s20  ;;  %3154 = vrot.lane.b32.xlu1 %v3143_v50, %s3216_s21 }
 0x550   :  { %3164 = vrot.lane.b32.xlu2 %v3143_v50, %s3218_s23 }
 0x557   :  { %3174 = vrot.lane.b32.xlu0 %v3143_v50, %s3220_s25  ;;  %3169 = vrot.lane.b32.xlu1 %v3143_v50, %s3217_s22 }
 0x558   :  { %2351 = vrot.lane.b32.xlu2 %v2072_v42, %s3217_s22 }
 0x55f   :  { %2459 = vrot.lane.b32.xlu0 %v2072_v42, %s3219_s24  ;;  %2513 = vrot.lane.b32.xlu1 %v2072_v42, %s3220_s25 }
 0x560   :  { %3179 = vrot.lane.b32.xlu2 %v3143_v50, %s3219_s24 }
 0x567   :  { %2601 = vperm.xlu0 %3136, %v3564_v11   ;;  %2579 = vperm.xlu1 %3137, %v3481_v8  }
 0x568   :  { %2596 = vperm.xlu2 %3090, %v3487_v9  }
 0x56f   :  { %1309 = vperm.xlu0 %3136, %v1306_v51   ;;  %2606 = vperm.xlu1 %3137, %v3569_v13  }
 0x570   :  { %2611 = vperm.xlu2 %3090, %v3495_v12  }
 0x577   :  { %2696 = vperm.xlu1 %3137, %v2693_v54  }
 0x592   :  { %v2085_v58 = vpop.permute.xlu2 %2084 }
 0x59a   :  { %v2299_v11 = vpop.permute.xlu2 %2298 }
 0x5a2   :  { %v3150_v61 = vpop.permute.xlu2 %3149 }
 0x5a3   :  { %v3152_v8 = vunpack.i.h.bf16 %v3150_v61  ;;  %v3151_v2 = vunpack.i.l.bf16 %v3150_v61 }
 0x5a5   :  { %v2140_v9 = vsel %vm186_vm4, %v3151_v2, %v3152_v8 }
 0x5a6   :  { %2162 = vmatpush.msrb.mxu0 %v2140_v9 }
 0x5a7   :  { %3037 = vmatmul.msk.f32.vlgmr.msrb.gmra.mxu0 %vm697_vm6, %v3525_v49 }
 0x5a9   :  { %v2139_v62 = vpop.permute.xlu0 %2138  ;;  %v2193_v13 = vpop.permute.xlu1 %2192 }
 0x5aa   :  { %v2141_v12 = vsel %vm186_vm4, %v3152_v8, %v2139_v62  ;;  %v3165_v5 = vpop.permute.xlu2 %3164  ;;  %vm4027_vm4 = vmmov %vm4026_vm0 }
 0x5ab   :  { %2182 = vmatpush.msrb.mxu1 %v2141_v12  ;;  %v3167_v53 = vunpack.i.h.bf16 %v3165_v5  ;;  %v3166_v31 = vunpack.i.l.bf16 %v3165_v5 }
 0x5ac   :  { %3038 = vmatmul.msk.f32.vlgmr.msrb.gmra.mxu1 %vm697_vm6, %v3525_v49 }
 0x5ad   :  { %v2407_v42 = vsel %vm470_vm12, %v3166_v31, %v3167_v53 }
 0x5b1   :  { %v3145_v63 = vpop.permute.xlu0 %3144  ;;  %v3140_v0 = vpop.permute.xlu1 %3139 }
 0x5b2   :  { %v3147_v6 = vunpack.i.h.bf16 %v3145_v63  ;;  %v3146_v10 = vunpack.i.l.bf16 %v3145_v63  ;;  %v3142_v14 = vunpack.i.h.bf16 %v3140_v0  ;;  %v3141_v60 = vunpack.i.l.bf16 %v3140_v0  ;;  %v2352_v29 = vpop.permute.xlu2 %2351 }
 0x5b4   :  { %v2086_v55 = vsel %vm126_vm8, %v3141_v60, %v3142_v14  ;;  %v2087_v47 = vsel %vm126_vm8, %v3142_v14, %v2085_v58  ;;  %v2194_v15 = vsel %vm244_vm10, %v3146_v10, %v3147_v6  ;;  %v2195_v18 = vsel %vm244_vm10, %v3147_v6, %v2193_v13 }
 0x5b5   :  { %2108 = vmatpush.msrb.mxu2 %v2086_v55  ;;  %2128 = vmatpush.msrb.mxu3 %v2087_v47  ;;  %vm4028_vm8 = vcmask 908288   ;;  %vm4030_vm10 = vcmask 646144  }
 0x5b6   :  { %3034 = vmatmul.msk.f32.vlgmr.msrb.gmra.mxu2 %vm697_vm6, %v3502_v19  ;;  %3035 = vmatmul.msk.f32.vlgmr.msrb.gmra.mxu3 %vm697_vm6, %v3502_v19  ;;  %vm4029_vm9 = vmmov %vm4028_vm8 }
 0x5b7   :  { %2216 = vmatpush.msra.mxu2 %v2194_v15  ;;  %2236 = vmatpush.msra.mxu3 %v2195_v18  ;;  %vm4033_vm5 = vmmov %vm4030_vm10 }
 0x5b9   :  { %v2406_v49 = vpop.permute.xlu0 %2405  ;;  %v2246_v23 = vpop.permute.xlu1 %2245 }
 0x5ba   :  { %v3180_v39 = vpop.permute.xlu2 %3179 }
 0x5bb   :  { %v3182_v48 = vunpack.i.h.bf16 %v3180_v39  ;;  %v3181_v50 = vunpack.i.l.bf16 %v3180_v39 }
 0x5be   :  { %3040 = vmatmul.msk.f32.vlgmr.msra.gmra.mxu2 %vm697_vm6, %v3512_v34  ;;  %3041 = vmatmul.msk.f32.vlgmr.msra.gmra.mxu3 %vm697_vm6, %v3512_v34  ;;  %v2408_v34 = vsel %vm470_vm12, %v3167_v53, %v2406_v49 }
 0x5c1   :  { %v3160_v21 = vpop.permute.xlu0 %3159  ;;  %v3155_v22 = vpop.permute.xlu1 %3154 }
 0x5c2   :  { %v3162_v40 = vunpack.i.h.bf16 %v3160_v21  ;;  %v3161_v33 = vunpack.i.l.bf16 %v3160_v21  ;;  %v3157_v57 = vunpack.i.h.bf16 %v3155_v22  ;;  %v3156_v30 = vunpack.i.l.bf16 %v3155_v22 }
 0x5c4   :  { %v2247_v19 = vsel %vm4026_vm0, %v3161_v33, %v3162_v40  ;;  %v2248_v35 = vsel %vm4027_vm4, %v3162_v40, %v2246_v23  ;;  %v2300_v59 = vsel %vm356_vm11, %v3156_v30, %v3157_v57  ;;  %v2301_v37 = vsel %vm356_vm11, %v3157_v57, %v2299_v11 }
 0x5c5   :  { %2269 = vmatpush.msra.mxu0 %v2247_v19  ;;  %2289 = vmatpush.msra.mxu1 %v2248_v35  ;;  %vm4031_vm11 = vcmask 654336  }
 0x5c6   :  { %2322 = vmatpush.msrb.mxu2 %v2300_v59  ;;  %2342 = vmatpush.msrb.mxu3 %v2301_v37  ;;  %vm4032_vm12 = vmmov %vm4031_vm11 }
 0x5c7   :  { %3042 = vmatmul.msk.f32.vlgmr.msra.gmra.mxu0 %vm697_vm6, %v3547_v4  ;;  %3043 = vmatmul.msk.f32.vlgmr.msra.gmra.mxu1 %vm697_vm6, %v3547_v4 }
 0x5c8   :  { %3044 = vmatmul.msk.f32.vlgmr.msrb.gmra.mxu2 %vm697_vm6, %v3532_v52  ;;  %3045 = vmatmul.msk.f32.vlgmr.msrb.gmra.mxu3 %vm697_vm6, %v3532_v52  ;;  %v2461_v52 = vsel %vm4031_vm11, %v3181_v50, %v3182_v48 }
 0x5c9   :  { %2429 = vmatpush.msra.mxu2 %v2407_v42  ;;  %2449 = vmatpush.msra.mxu3 %v2408_v34  ;;  %v3175_v51 = vpop.permute.xlu0 %3174  ;;  %v3170_v54 = vpop.permute.xlu1 %3169 }
 0x5ca   :  { %v3177_v58 = vunpack.i.h.bf16 %v3175_v51  ;;  %v3176_v11 = vunpack.i.l.bf16 %v3175_v51  ;;  %v3172_v61 = vunpack.i.h.bf16 %v3170_v54  ;;  %v3171_v4 = vunpack.i.l.bf16 %v3170_v54 }
 0x5cc   :  { %v2353_v8 = vsel %vm4028_vm8, %v3171_v4, %v3172_v61  ;;  %v2354_v2 = vsel %vm4029_vm9, %v3172_v61, %v2352_v29  ;;  %v2515_v9 = vsel %vm4030_vm10, %v3176_v11, %v3177_v58 }
 0x5cd   :  { %2375 = vmatpush.msrb.mxu0 %v2353_v8  ;;  %2395 = vmatpush.msrb.mxu1 %v2354_v2 }
 0x5ce   :  { %2537 = vmatpush.msrb.mxu2 %v2515_v9 }
 0x5cf   :  { %2483 = vmatpush.msra.mxu0 %v2461_v52  ;;  %3047 = vmatmul.msk.f32.vlgmr.msrb.gmra.mxu1 %vm697_vm6, %v3583_v24 }
 0x5d0   :  { %3046 = vmatmul.msk.f32.vlgmr.msrb.gmra.mxu0 %vm697_vm6, %v3583_v24  ;;  %3049 = vmatmul.msk.f32.vlgmr.msra.gmra.mxu2 %vm697_vm6, %v3554_v7 }
 0x5d1   :  { %3050 = vmatmul.msk.f32.vlgmr.msra.gmra.mxu3 %vm697_vm6, %v3554_v7  ;;  %v2460_v62 = vpop.permute.xlu0 %2459  ;;  %v2514_v13 = vpop.permute.xlu1 %2513 }
 0x5d2   :  { %v2462_v12 = vsel %vm4032_vm12, %v3182_v48, %v2460_v62  ;;  %v2516_v63 = vsel %vm4033_vm5, %v3177_v58, %v2514_v13 }
 0x5d3   :  { %2503 = vmatpush.msra.mxu1 %v2462_v12  ;;  %2557 = vmatpush.msrb.mxu3 %v2516_v63 }
 0x5d7   :  { %3053 = vmatmul.msk.f32.vlgmr.msra.gmra.mxu1 %vm697_vm6, %v3601_v32 }
 0x5d8   :  { %3052 = vmatmul.msk.f32.vlgmr.msra.gmra.mxu0 %vm697_vm6, %v3601_v32  ;;  %3055 = vmatmul.msk.f32.vlgmr.msrb.gmra.mxu2 %vm697_vm6, %v3588_v25 }
 0x5d9   :  { %3056 = vmatmul.msk.f32.vlgmr.msrb.gmra.mxu3 %vm697_vm6, %v3588_v25  ;;  %v3905_v7 = vpop.permute.xlu0 %2601 }
 0x5e1   :  { %v1310_v24 = vpop.permute.xlu0 %1309 }
 0x5e2   :  { %v1373_v0 = vadd.f32 %v3803_v56, %v1310_v24  ;;  %v1393_v5 = vadd.f32 %v3801_v20, %v1310_v24  ;;  %v1413_v6 = vadd.f32 %v3807_v45, %v1310_v24  ;;  %v1433_v32 = vadd.f32 %v3805_v43, %v1310_v24 }
 0x5e3   :  { %v1453_v10 = vadd.f32 %v3811_v44, %v1310_v24  ;;  %v1473_v14 = vadd.f32 %v3809_v1, %v1310_v24  ;;  %v1333_v25 = vadd.f32 %v3799_v26, %v1310_v24  ;;  %v1353_v60 = vadd.f32 %v3797_v17, %v1310_v24 }
 0x5e4   :  { %v1477_v55 = vrot.slane %v1373_v0, 5  ;;  %v1478_v47 = vrot.slane %v1393_v5, 5  ;;  %v1483_v15 = vrot.slane %v1413_v6, 2  ;;  %v1484_v56 = vrot.slane %v1433_v32, 2  ;;  %v2580_v32 = vpop.permute.xlu1 %2579 }
 0x5e5   :  { %v1489_v18 = vrot.slane %v1453_v10, 7  ;;  %v1490_v20 = vrot.slane %v1473_v14, 7 }
 0x5e6   :  { %v1494_v49 = vsel %vm1493_vm15, %v1333_v25, %v1477_v55  ;;  %v1495_v45 = vsel %vm1493_vm15, %v1353_v60, %v1478_v47 }
 0x5e7   :  { %v1497_v43 = vsel %vm1496_vm7, %v1494_v49, %v1483_v15  ;;  %v1498_v44 = vsel %vm1496_vm7, %v1495_v45, %v1484_v56  ;;  %v1500_v1 = vsel %vm1499_vm1, %v1483_v15, %v1489_v18  ;;  %v1501_v17 = vsel %vm1499_vm1, %v1484_v56, %v1490_v20 }
 0x5e8   :  { %1502 = vst [vmem:[%s3990_s9] sm:$0xff] %v1497_v43 }
 0x5e9   :  { %1503 = vst [vmem:[%s3990_s9 + $0x8] sm:$0xff] %v1498_v44 }
 0x5ea   :  { %1504 = vst [vmem:[%s3990_s9 + $0x10] sm:$0xf] %v1500_v1 }
 0x5eb   :  { %1505 = vst [vmem:[%s3990_s9 + $0x18] sm:$0xf] %v1501_v17 }
 0x5ec   :  { %v2607_v49 = vpop.permute.xlu1 %2606 }
 0x624   :  { %v2164_v29 = vpop.f32.mrf.mxu0 }
 0x629   :  { %v2184_v21 = vpop.f32.mrf.mxu1 }
 0x639   :  { %v2110_v26 = vpop.f32.mrf.mxu2  ;;  %v2130_v23 = vpop.f32.mrf.mxu3 }
 0x641   :  { %v2218_v22 = vpop.f32.mrf.mxu2  ;;  %v2238_v40 = vpop.f32.mrf.mxu3 }
 0x644   :  { %v2271_v33 = vpop.f32.mrf.mxu0  ;;  %v2291_v57 = vpop.f32.mrf.mxu1 }
 0x645   :  { %v2272_v37 = vadd.f32 %v2271_v33, %v2110_v26  ;;  %v2292_v39 = vadd.f32 %v2291_v57, %v2130_v23 }
 0x64b   :  { %v2324_v30 = vpop.f32.mrf.mxu2  ;;  %v2344_v53 = vpop.f32.mrf.mxu3 }
 0x64c   :  { %v2397_v19 = vpop.f32.mrf.mxu1  ;;  %v2325_v51 = vadd.f32 %v2324_v30, %v2164_v29  ;;  %v2345_v54 = vadd.f32 %v2344_v53, %v2184_v21 }
 0x64d   :  { %v2377_v31 = vpop.f32.mrf.mxu0  ;;  %v2398_v11 = vadd.f32 %v2397_v19, %v2238_v40  ;;  %v2697_v19 = vpop.permute.xlu1 %2696 }
 0x64e   :  { %v2378_v58 = vadd.f32 %v2377_v31, %v2218_v22 }
 0x653   :  { %v2431_v35 = vpop.f32.mrf.mxu2 }
 0x654   :  { %v2451_v59 = vpop.f32.mrf.mxu3  ;;  %v2562_v34 = vadd.f32 %v2431_v35, %v2272_v37  ;;  %v2505_v50 = vpop.f32.mrf.mxu1 }
 0x655   :  { %v2563_v42 = vadd.f32 %v2451_v59, %v2292_v39  ;;  %v2485_v48 = vpop.f32.mrf.mxu0  ;;  %v2565_v2 = vadd.f32 %v2505_v50, %v2345_v54 }
 0x656   :  { %v2568_v61 = vmul.f32 %v3440_v28, %v2562_v34  ;;  %v2564_v8 = vadd.f32 %v2485_v48, %v2325_v51 }
 0x657   :  { %v2569_v4 = vmul.f32 %v3444_v36, %v2563_v42  ;;  %v2597_v36 = vpop.permute.xlu2 %2596 }
 0x658   :  { %v2570_v12 = vadd.f32 %v2568_v61, %v2564_v8 }
 0x659   :  { %v2571_v63 = vadd.f32 %v2569_v4, %v2565_v2 }
 0x65b   :  { %v2539_v9 = vpop.f32.mrf.mxu2 }
 0x65c   :  { %v2559_v52 = vpop.f32.mrf.mxu3  ;;  %v2566_v62 = vadd.f32 %v2539_v9, %v2378_v58 }
 0x65d   :  { %v2567_v13 = vadd.f32 %v2559_v52, %v2398_v11 }
 0x65e   :  { %v2572_v24 = vmul.f32 %v3447_v41, %v2566_v62 }
 0x65f   :  { %v2573_v0 = vmul.f32 %v3450_v46, %v2567_v13 }
 0x660   :  { %v2574_v5 = vadd.f32 %v2572_v24, %v2570_v12 }
 0x661   :  { %v2575_v6 = vadd.f32 %v2573_v0, %v2571_v63 }
 0x662   :  { %v2582_v10 = vadd.f32 %v2580_v32, %v2574_v5 }
 0x663   :  { %v2583_v14 = vadd.f32 %v2580_v32, %v2575_v6 }
 0x664   :  { %v2584_v28 = vmax.f32 %v2582_v10, 0.0 }
 0x665   :  { %v2585_v25 = vmax.f32 %v2583_v14, 0.0 }
 0x666   :  { %2641 = vmatpush.msrb.mxu0 %v2584_v28 }
 0x667   :  { %2670 = vmatpush.msrb.mxu1 %v2585_v25  ;;  %3057 = vmatmul.msk.f32.vlgmr.msrb.gmra.mxu0 %vm697_vm6, %v3655_v3 }
 0x668   :  { %3061 = vmatmul.msk.f32.vlgmr.msrb.gmra.mxu1 %vm697_vm6, %v3655_v3 }
 0x66f   :  { %3058 = vmatmul.msk.f32.gmra.mxu0 %vm697_vm6, %v3668_v16 }
 0x670   :  { %3062 = vmatmul.msk.f32.gmra.mxu1 %vm697_vm6, %v3668_v16  ;;  %v2692_v16 = vld [vmem:[#allocation3] sm:$0x7] }
 0x677   :  { %3059 = vmatmul.msk.f32.gmra.mxu0 %vm697_vm6, %v3683_v27 }
 0x678   :  { %3063 = vmatmul.msk.f32.gmra.mxu1 %vm697_vm6, %v3683_v27 }
 0x67f   :  { %3060 = vmatmul.msk.f32.gmra.mxu0 %vm697_vm6, %v3696_v38 }
 0x680   :  { %3064 = vmatmul.msk.f32.gmra.mxu1 %vm697_vm6, %v3696_v38 }
 0x6e4   :  { %v2643_v41 = vpop.f32.mrf.mxu0 }
 0x6e5   :  { %v2672_v46 = vpop.f32.mrf.mxu1  ;;  %v2644_v3 = vadd.f32 %v2643_v41, %v2597_v36 }
 0x6e6   :  { %v2673_v60 = vadd.f32 %v2672_v46, %v2597_v36 }
 0x6e7   :  { %v2684_v55 = vmax.f32 %v2644_v3, 0.0 }
 0x6e8   :  { %v2685_v47 = vmax.f32 %v2673_v60, 0.0 }
 0x6e9   :  { %2717 = vmatpush.msra.mxu2 %v2684_v55 }
 0x6ea   :  { %2737 = vmatpush.msra.mxu3 %v2685_v47  ;;  %3065 = vmatmul.msk.f32.vlgmr.msra.gmra.mxu2 %vm697_vm6, %v2692_v16 }
 0x6eb   :  { %3066 = vmatmul.msk.f32.vlgmr.msra.gmra.mxu3 %vm697_vm6, %v2692_v16 }
 0x6ec   :  { %v2646_v27 = vpop.f32.mrf.mxu0 }
 0x6ed   :  { %v2675_v15 = vpop.f32.mrf.mxu1  ;;  %v2647_v56 = vadd.f32 %v2646_v27, %v3905_v7 }
 0x6ee   :  { %v2676_v38 = vadd.f32 %v2675_v15, %v3905_v7  ;;  %v2612_v7 = vpop.permute.xlu2 %2611 }
 0x6ef   :  { %v2686_v18 = vmax.f32 %v2647_v56, 0.0 }
 0x6f0   :  { %v2687_v20 = vmax.f32 %v2676_v38, 0.0 }
 0x6f1   :  { %2757 = vmatpush.msrb.mxu2 %v2686_v18 }
 0x6f2   :  { %2777 = vmatpush.msrb.mxu3 %v2687_v20  ;;  %3067 = vmatmul.msk.f32.vlgmr.msrb.gmra.mxu2 %vm697_vm6, %v2692_v16 }
 0x6f3   :  { %3068 = vmatmul.msk.f32.vlgmr.msrb.gmra.mxu3 %vm697_vm6, %v2692_v16 }
 0x6f4   :  { %v2649_v45 = vpop.f32.mrf.mxu0 }
 0x6f5   :  { %v2678_v43 = vpop.f32.mrf.mxu1  ;;  %v2650_v44 = vadd.f32 %v2649_v45, %v2607_v49 }
 0x6f6   :  { %v2679_v1 = vadd.f32 %v2678_v43, %v2607_v49 }
 0x6f7   :  { %v2688_v17 = vmax.f32 %v2650_v44, 0.0 }
 0x6f8   :  { %v2689_v26 = vmax.f32 %v2679_v1, 0.0 }
 0x6f9   :  { %2797 = vmatpush.msra.mxu2 %v2688_v17 }
 0x6fa   :  { %2817 = vmatpush.msra.mxu3 %v2689_v26  ;;  %3069 = vmatmul.msk.f32.vlgmr.msra.gmra.mxu2 %vm697_vm6, %v2692_v16 }
 0x6fb   :  { %3070 = vmatmul.msk.f32.vlgmr.msra.gmra.mxu3 %vm697_vm6, %v2692_v16 }
 0x6fc   :  { %v2652_v23 = vpop.f32.mrf.mxu0 }
 0x6fd   :  { %v2681_v29 = vpop.f32.mrf.mxu1  ;;  %v2653_v21 = vadd.f32 %v2652_v23, %v2612_v7 }
 0x6fe   :  { %v2682_v22 = vadd.f32 %v2681_v29, %v2612_v7 }
 0x6ff   :  { %v2690_v40 = vmax.f32 %v2653_v21, 0.0 }
 0x700   :  { %v2691_v33 = vmax.f32 %v2682_v22, 0.0 }
 0x701   :  { %2837 = vmatpush.msrb.mxu2 %v2690_v40 }
 0x702   :  { %2857 = vmatpush.msrb.mxu3 %v2691_v33  ;;  %3071 = vmatmul.msk.f32.vlgmr.msrb.gmra.mxu2 %vm697_vm6, %v2692_v16 }
 0x703   :  { %3072 = vmatmul.msk.f32.vlgmr.msrb.gmra.mxu3 %vm697_vm6, %v2692_v16 }
 0x76d   :  { %v2719_v57 = vpop.f32.mrf.mxu2 }
 0x76e   :  { %v2739_v30 = vpop.f32.mrf.mxu3  ;;  %v2720_v51 = vadd.f32 %v2719_v57, %v2697_v19 }
 0x76f   :  { %v2740_v54 = vadd.f32 %v2739_v30, %v2697_v19 }
 0x775   :  { %v2759_v53 = vpop.f32.mrf.mxu2 }
 0x776   :  { %v2779_v31 = vpop.f32.mrf.mxu3  ;;  %v2760_v35 = vadd.f32 %v2759_v53, %v2697_v19 }
 0x777   :  { %v2780_v59 = vadd.f32 %v2779_v31, %v2697_v19 }
 0x778   :  { %v2864_v37 = vrot.slane %v2760_v35, 5 }
 0x779   :  { %v2865_v39 = vrot.slane %v2780_v59, 5 }
 0x77a   :  { %v2880_v61 = vsel %vm1493_vm15, %v2720_v51, %v2864_v37 }
 0x77b   :  { %v2881_v4 = vsel %vm1493_vm15, %v2740_v54, %v2865_v39 }
 0x77d   :  { %v2799_v34 = vpop.f32.mrf.mxu2 }
 0x77e   :  { %v2819_v42 = vpop.f32.mrf.mxu3  ;;  %v2800_v48 = vadd.f32 %v2799_v34, %v2697_v19 }
 0x77f   :  { %v2820_v50 = vadd.f32 %v2819_v42, %v2697_v19 }
 0x780   :  { %v2870_v58 = vrot.slane %v2800_v48, 2 }
 0x781   :  { %v2871_v11 = vrot.slane %v2820_v50, 2 }
 0x782   :  { %v2882_v8 = vsel %vm1496_vm7, %v2880_v61, %v2870_v58 }
 0x783   :  { %v2883_v2 = vsel %vm1496_vm7, %v2881_v4, %v2871_v11  ;;  %3073 = vst [vmem:[%s3990_s9 + $0x20] sm:$0xff] %v2882_v8 }
 0x784   :  { %3074 = vst [vmem:[%s3990_s9 + $0x28] sm:$0xff] %v2883_v2 }
 0x785   :  { %v2839_v9 = vpop.f32.mrf.mxu2 }
 0x786   :  { %v2859_v52 = vpop.f32.mrf.mxu3  ;;  %v2840_v62 = vadd.f32 %v2839_v9, %v2697_v19 }
 0x787   :  { %v2860_v13 = vadd.f32 %v2859_v52, %v2697_v19 }
 0x788   :  { %v2876_v12 = vrot.slane %v2840_v62, 7 }
 0x789   :  { %v2877_v63 = vrot.slane %v2860_v13, 7 }
 0x78a   :  { %v2884_v24 = vsel %vm1499_vm1, %v2870_v58, %v2876_v12 }
 0x78b   :  { %v2885_v0 = vsel %vm1499_vm1, %v2871_v11, %v2877_v63  ;;  %3075 = vst [vmem:[%s3990_s9 + $0x30] sm:$0xf] %v2884_v24 }
 0x78c   :  { %3076 = vst [vmem:[%s3990_s9 + $0x38] sm:$0xf] %v2885_v0 }
 0x78d   :  { %2895 = vsyncpa [#allocation4], 1 }

</bundles_post_ra>
